<compile_context>
chip_gen: v7x
topology: tpu7x:2x2x1
jax: 0.10.0
libtpu: 0.0.40
codegen_flags: <defaults>
</compile_context>

<pallas_src>
import functools

import jax
import jax.numpy as jnp
from jax.experimental import pallas as pl
from jax.experimental.pallas import tpu as pltpu

EPS = 1e-6


def _layernorm(x, alpha, bias):
    # Custom LayerNormalization: alpha * (x - mean) / (std + eps) + bias,
    # unbiased (N-1) variance, two-pass statistics + approx reciprocal (EUP).
    d = x.shape[-1]
    mean = jnp.sum(x, axis=-1, keepdims=True) * (1.0 / d)
    diff = x - mean
    var = jnp.sum(diff * diff, axis=-1, keepdims=True) * (1.0 / (d - 1))
    std = jnp.sqrt(var)
    inv = pl.reciprocal(std + EPS, approx=True)
    return diff * (alpha * inv) + bias


def encoder_layer_kernel(scalars_ref, x_ref, kbias_ref,
                         wqkv_ref, wo_ref, w1_ref, b1_ref, w2_ref, b2_ref,
                         o_ref, x_scr, *, num_heads):
    l = pl.program_id(1)
    n_layers = pl.num_programs(1)
    TB, S, D = x_ref.shape
    dh = D // num_heads
    scale = 1.0 / float(dh) ** 0.5

    # Load the input activation into the carried f32 accumulator at the first layer.
    @pl.when(l == 0)
    def _init():
        x_scr[...] = x_ref[...].astype(jnp.float32).reshape(TB * S, D)

    x = x_scr[...]                                   # (TB*S, D) f32 residual stream

    a1 = scalars_ref[4 * l + 0]
    c1 = scalars_ref[4 * l + 1]
    a2 = scalars_ref[4 * l + 2]
    c2 = scalars_ref[4 * l + 3]

    # --- residual 1: pre-norm multi-head self-attention (fused QKV projection) ---
    xn = _layernorm(x, a1, c1).astype(jnp.bfloat16)
    qkv = jnp.dot(xn, wqkv_ref[0], preferred_element_type=jnp.float32)   # (TB*S, 3D)

    attn_rows = []
    for b in range(TB):                              # static unroll over batch-tile rows
        row = qkv[b * S:(b + 1) * S, :]              # (S, 3D) static sublane slice
        qh = jnp.swapaxes(row[:, 0 * D:1 * D].reshape(S, num_heads, dh), 0, 1)
        kh = jnp.swapaxes(row[:, 1 * D:2 * D].reshape(S, num_heads, dh), 0, 1)
        vh = jnp.swapaxes(row[:, 2 * D:3 * D].reshape(S, num_heads, dh), 0, 1)
        s = jnp.einsum('hqd,hkd->hqk',
                       qh.astype(jnp.bfloat16), kh.astype(jnp.bfloat16),
                       preferred_element_type=jnp.float32)               # (H, S, S)
        s = s * scale + kbias_ref[b][None, :, :]     # additive key mask (1,1,S)
        m = jnp.max(s, axis=-1, keepdims=True)
        p = jnp.exp(s - m)
        p = p * pl.reciprocal(jnp.sum(p, axis=-1, keepdims=True), approx=True)
        o = jnp.einsum('hqk,hkd->hqd', p.astype(jnp.bfloat16),
                       vh.astype(jnp.bfloat16),
                       preferred_element_type=jnp.float32)               # (H, S, dh)
        attn_rows.append(jnp.swapaxes(o, 0, 1).reshape(S, D))            # (S, D)
    attn = attn_rows[0] if TB == 1 else jnp.concatenate(attn_rows, axis=0)
    attn = jnp.dot(attn.astype(jnp.bfloat16), wo_ref[0],
                   preferred_element_type=jnp.float32)
    x = x + attn                                     # dropout = identity (eval)

    # --- residual 2: pre-norm feed-forward -------------------------------------
    xn2 = _layernorm(x, a2, c2).astype(jnp.bfloat16)
    h1 = jnp.dot(xn2, w1_ref[0], preferred_element_type=jnp.float32) + b1_ref[0]
    h1 = jnp.maximum(h1, 0.0)
    ff = jnp.dot(h1.astype(jnp.bfloat16), w2_ref[0],
                 preferred_element_type=jnp.float32) + b2_ref[0]
    x = x + ff

    x_scr[...] = x                                   # carry to next layer

    # --- final Encoder.norm after the last layer --------------------------------
    @pl.when(l == n_layers - 1)
    def _final():
        fa = scalars_ref[4 * n_layers + 0]
        fb = scalars_ref[4 * n_layers + 1]
        o_ref[...] = _layernorm(x, fa, fb).reshape(TB, S, D).astype(o_ref.dtype)


def encoder_forward(x, key_bias, params, *, num_heads, batch_tiles=None):
    B, S, D = x.shape
    L, _, F = params["w1"].shape

    if batch_tiles is None:
        # Two batch tiles keep both v7x TensorCores busy; weights stream NB*L times.
        batch_tiles = 2 if (B >= 2 and B % 2 == 0) else 1
    NB = batch_tiles
    assert B % NB == 0, "batch must divide evenly into batch tiles"
    TB = B // NB

    kernel = functools.partial(encoder_layer_kernel, num_heads=num_heads)

    # --- VMEM budget: bf16 weights (double-buffered) + real f32/bf16 intermediates ---
    w_bytes = (3 * D * D + D * D + D * F + F * D) * 2 + (F + D) * 4
    act_bytes = (TB * S * (4 * D * 4          # residual scratch / attn / temps (f32)
                           + 3 * D * 4        # fused qkv (f32)
                           + 3 * D * 2        # q/k/v bf16 copies
                           + F * 4 + F * 2)   # h1 f32 + bf16
                 + num_heads * S * S * 4 * 2) # per-row scores + probs (f32)
    io_bytes = 2 * (TB * S * D * 4 + TB * S * D * x.dtype.itemsize + TB * S * 4)
    vmem_est = 2 * w_bytes + act_bytes + io_bytes

    try:
        info = pltpu.get_tpu_info()
        vmem_cap = int(getattr(info, "vmem_capacity_bytes", 64 * 2 ** 20))
    except Exception:
        vmem_cap = 64 * 2 ** 20                      # v7x per-TC capacity (most restrictive)
    vmem_limit = min(int(0.9 * vmem_cap), max(32 * 2 ** 20, int(1.25 * vmem_est)))

    flops = B * L * (8 * S * D * D + 4 * S * S * D + 4 * S * D * F)
    transcendentals = B * L * (num_heads * S * (S + 1) + 4 * S) + 2 * B * S
    bytes_accessed = NB * L * w_bytes + B * S * (2 * D + 1) * 4

    return pl.pallas_call(
        kernel,
        out_shape=jax.ShapeDtypeStruct((B, S, D), x.dtype),
        grid=(NB, L),
        in_specs=[
            pl.BlockSpec(memory_space=pltpu.MemorySpace.SMEM),      # LN scalars, flat 1-D
            pl.BlockSpec((TB, S, D), lambda nb, l: (nb, 0, 0)),     # x (const across layers)
            pl.BlockSpec((TB, 1, S), lambda nb, l: (nb, 0, 0)),     # additive key-mask bias
            pl.BlockSpec((1, D, 3 * D), lambda nb, l: (l, 0, 0)),   # fused wqkv (per-layer)
            pl.BlockSpec((1, D, D), lambda nb, l: (l, 0, 0)),       # wo
            pl.BlockSpec((1, D, F), lambda nb, l: (l, 0, 0)),       # w1
            pl.BlockSpec((1, 1, F), lambda nb, l: (l, 0, 0)),       # b1
            pl.BlockSpec((1, F, D), lambda nb, l: (l, 0, 0)),       # w2
            pl.BlockSpec((1, 1, D), lambda nb, l: (l, 0, 0)),       # b2
        ],
        out_specs=pl.BlockSpec((TB, S, D), lambda nb, l: (nb, 0, 0)),
        scratch_shapes=[pltpu.VMEM((TB * S, D), jnp.float32)],      # carried residual stream
        compiler_params=pltpu.CompilerParams(
            dimension_semantics=("parallel", "arbitrary"),
            vmem_limit_bytes=vmem_limit),
        cost_estimate=pl.CostEstimate(
            flops=flops, transcendentals=transcendentals,
            bytes_accessed=bytes_accessed),
    )(params["scalars"], x, key_bias,
      params["wqkv"], params["wo"],
      params["w1"], params["b1"], params["w2"], params["b2"])


def encoder_reference(x, kvalid, params, *, num_heads):
    """Pure-JAX f32 reference (same math as the PyTorch module)."""
    L, _, F = params["w1"].shape
    D = x.shape[-1]
    dh = D // num_heads
    scale = 1.0 / jnp.sqrt(jnp.float32(dh))
    hp = jax.lax.Precision.HIGHEST
    sc = params["scalars"]
    f32 = lambda w: w.astype(jnp.float32)

    def ln(z, a, b):
        mean = jnp.mean(z, axis=-1, keepdims=True)
        var = jnp.sum((z - mean) ** 2, axis=-1, keepdims=True) / (D - 1)
        return a * (z - mean) / (jnp.sqrt(var) + EPS) + b

    for l in range(L):
        a1, c1, a2, c2 = sc[4 * l + 0], sc[4 * l + 1], sc[4 * l + 2], sc[4 * l + 3]
        xn = ln(x, a1, c1)
        wqkv = f32(params["wqkv"][l])
        q = jnp.einsum("bsd,de->bse", xn, wqkv[:, :D], precision=hp)
        k = jnp.einsum("bsd,de->bse", xn, wqkv[:, D:2 * D], precision=hp)
        v = jnp.einsum("bsd,de->bse", xn, wqkv[:, 2 * D:], precision=hp)
        B, S, _ = q.shape
        qh = q.reshape(B, S, num_heads, dh).transpose(0, 2, 1, 3)
        kh = k.reshape(B, S, num_heads, dh).transpose(0, 2, 1, 3)
        vh = v.reshape(B, S, num_heads, dh).transpose(0, 2, 1, 3)
        s = jnp.einsum("bhqd,bhkd->bhqk", qh, kh, precision=hp) * scale
        s = jnp.where(kvalid[:, None, :, :] == 0, -1e9, s)
        p = jax.nn.softmax(s, axis=-1)
        o = jnp.einsum("bhqk,bhkd->bhqd", p, vh, precision=hp)
        o = o.transpose(0, 2, 1, 3).reshape(B, S, D)
        o = jnp.einsum("bsd,de->bse", o, f32(params["wo"][l]), precision=hp)
        x = x + o
        xn2 = ln(x, a2, c2)
        h1 = jax.nn.relu(
            jnp.einsum("bsd,df->bsf", xn2, f32(params["w1"][l]), precision=hp)
            + params["b1"][l])
        ff = jnp.einsum("bsf,fd->bsd", h1, f32(params["w2"][l]), precision=hp) \
            + params["b2"][l]
        x = x + ff
    return ln(x, sc[4 * L + 0], sc[4 * L + 1])


def init_params(key, num_layers, d_model, d_ff):
    ks = jax.random.split(key, 6)
    std = 0.02
    bf = lambda a: a.astype(jnp.bfloat16)   # weights stored bf16 at the call boundary
    wq = std * jax.random.normal(ks[0], (num_layers, d_model, d_model), jnp.float32)
    wk = std * jax.random.normal(ks[1], (num_layers, d_model, d_model), jnp.float32)
    wv = std * jax.random.normal(ks[2], (num_layers, d_model, d_model), jnp.float32)
    params = {
        # Fused QKV weight: one (D, 3D) MXU pass instead of three (D, D) passes.
        "wqkv": bf(jnp.concatenate([wq, wk, wv], axis=-1)),
        "wo": bf(std * jax.random.normal(ks[3], (num_layers, d_model, d_model), jnp.float32)),
        "w1": bf(std * jax.random.normal(ks[4], (num_layers, d_model, d_ff), jnp.float32)),
        "b1": jnp.zeros((num_layers, 1, d_ff), jnp.float32),
        "w2": bf(std * jax.random.normal(ks[5], (num_layers, d_ff, d_model), jnp.float32)),
        "b2": jnp.zeros((num_layers, 1, d_model), jnp.float32),
    }
    # Flat LN scalars: rows 0..L-1 = [ln1_alpha, ln1_bias, ln2_alpha, ln2_bias],
    # row L holds the final Encoder.norm [alpha, bias, _, _].  Flattened 1-D for SMEM.
    params["scalars"] = jnp.tile(
        jnp.array([1.0, 0.0, 1.0, 0.0], jnp.float32), (num_layers + 1,))
    return params


if __name__ == "__main__":
    B, S, D, H, F, L = 2, 8, 32, 4, 64, 2

    key = jax.random.PRNGKey(0)
    kx, kp = jax.random.split(key)
    x = jax.random.normal(kx, (B, S, D), jnp.float32)

    # Padding mask: batch 0 attends to all 8 key positions, batch 1 only to first 5.
    lengths = jnp.array([8, 5])
    kvalid = (jnp.arange(S)[None, :] < lengths[:, None]).astype(jnp.float32)   # (B, S)
    kvalid = kvalid[:, None, :]                                                # (B, 1, S)
    # Precomputed additive attention bias fed to the kernel (0 = keep, -1e9 = masked).
    key_bias = jnp.where(kvalid == 0, jnp.float32(-1e9), jnp.float32(0.0))     # (B, 1, S)

    params = init_params(kp, L, D, F)

    out = encoder_forward(x, key_bias, params, num_heads=H)
    out = jax.block_until_ready(out)

    ref = encoder_reference(x, kvalid, params, num_heads=H)
    assert out.shape == (B, S, D)
    assert bool(jnp.all(jnp.isfinite(out)))
    # bf16 MXU inputs + approx reciprocal vs f32 HIGHEST reference.
    assert bool(jnp.allclose(out, ref, atol=2e-2, rtol=2e-2)), "mismatch vs JAX reference"

    print("KERNEL_OK")
</pallas_src>

<mosaic_0001>
module attributes {stable_mosaic.version = 11 : i64} {
  func.func @encoder_layer_kernel(%arg0: i32, %arg1: i32, %arg2: memref<12xf32, #tpu.memory_space<smem>>, %arg3: memref<1x8x32xf32, #tpu.memory_space<vmem>>, %arg4: memref<1x1x8xf32, #tpu.memory_space<vmem>>, %arg5: memref<1x32x96xbf16, #tpu.memory_space<vmem>>, %arg6: memref<1x32x32xbf16, #tpu.memory_space<vmem>>, %arg7: memref<1x32x64xbf16, #tpu.memory_space<vmem>>, %arg8: memref<1x1x64xf32, #tpu.memory_space<vmem>>, %arg9: memref<1x64x32xbf16, #tpu.memory_space<vmem>>, %arg10: memref<1x1x32xf32, #tpu.memory_space<vmem>>, %arg11: memref<1x8x32xf32, #tpu.memory_space<vmem>>, %arg12: memref<8x32xf32, #tpu.memory_space<vmem>>) attributes {dimension_semantics = [#tpu.dimension_semantics<parallel>, #tpu.dimension_semantics<arbitrary>], iteration_bounds = array<i64: 2, 2>, scalar_prefetch = 0 : i64, scratch_operands = 1 : i64, tpu.core_type = #tpu.core_type<tc>, window_params = [{transform_indices = @transform_0, window_bounds = array<i64: 12>}, {transform_indices = @transform_1, window_bounds = array<i64: 1, 8, 32>}, {transform_indices = @transform_2, window_bounds = array<i64: 1, 1, 8>}, {transform_indices = @transform_3, window_bounds = array<i64: 1, 32, 96>}, {transform_indices = @transform_4, window_bounds = array<i64: 1, 32, 32>}, {transform_indices = @transform_5, window_bounds = array<i64: 1, 32, 64>}, {transform_indices = @transform_6, window_bounds = array<i64: 1, 1, 64>}, {transform_indices = @transform_7, window_bounds = array<i64: 1, 64, 32>}, {transform_indices = @transform_8, window_bounds = array<i64: 1, 1, 32>}, {transform_indices = @transform_9, window_bounds = array<i64: 1, 8, 32>}]} {
    %c0_i32 = arith.constant 0 : i32
    %0 = arith.cmpi eq, %arg1, %c0_i32 : i32
    %1 = arith.extui %0 : i1 to i32
    %c0_i32_0 = arith.constant 0 : i32
    %2 = arith.cmpi ne, %1, %c0_i32_0 : i32
    scf.if %2 {
      %c0_50 = arith.constant 0 : index
      %c0_51 = arith.constant 0 : index
      %c0_52 = arith.constant 0 : index
      %128 = vector.load %arg3[%c0_50, %c0_51, %c0_52] : memref<1x8x32xf32, #tpu.memory_space<vmem>>, vector<1x8x32xf32>
      %129 = vector.shape_cast %128 : vector<1x8x32xf32> to vector<8x32xf32>
      %c0_53 = arith.constant 0 : index
      %c0_54 = arith.constant 0 : index
      %130 = vector.load %arg12[%c0_53, %c0_54] : memref<8x32xf32, #tpu.memory_space<vmem>>, vector<8x32xf32>
      tpu.vector_store %arg12[%c0_53, %c0_54], %129 {strides = array<i32>} : memref<8x32xf32, #tpu.memory_space<vmem>>, vector<8x32xf32>,
    } else {
    }
    %c0 = arith.constant 0 : index
    %c0_1 = arith.constant 0 : index
    %3 = vector.load %arg12[%c0, %c0_1] : memref<8x32xf32, #tpu.memory_space<vmem>>, vector<8x32xf32>
    %c4_i32 = arith.constant 4 : i32
    %4 = arith.muli %c4_i32, %arg1 : i32
    %c0_i32_2 = arith.constant 0 : i32
    %5 = arith.addi %4, %c0_i32_2 : i32
    %6 = arith.index_cast %5 : i32 to index
    %7 = memref.load %arg2[%6] : memref<12xf32, #tpu.memory_space<smem>>
    %c4_i32_3 = arith.constant 4 : i32
    %8 = arith.muli %c4_i32_3, %arg1 : i32
    %c1_i32 = arith.constant 1 : i32
    %9 = arith.addi %8, %c1_i32 : i32
    %10 = arith.index_cast %9 : i32 to index
    %11 = memref.load %arg2[%10] : memref<12xf32, #tpu.memory_space<smem>>
    %c4_i32_4 = arith.constant 4 : i32
    %12 = arith.muli %c4_i32_4, %arg1 : i32
    %c2_i32 = arith.constant 2 : i32
    %13 = arith.addi %12, %c2_i32 : i32
    %14 = arith.index_cast %13 : i32 to index
    %15 = memref.load %arg2[%14] : memref<12xf32, #tpu.memory_space<smem>>
    %c4_i32_5 = arith.constant 4 : i32
    %16 = arith.muli %c4_i32_5, %arg1 : i32
    %c3_i32 = arith.constant 3 : i32
    %17 = arith.addi %16, %c3_i32 : i32
    %18 = arith.index_cast %17 : i32 to index
    %19 = memref.load %arg2[%18] : memref<12xf32, #tpu.memory_space<smem>>
    %cst = arith.constant dense<0.000000e+00> : vector<8xf32>
    %20 = vector.multi_reduction <add>, %3, %cst [1] : vector<8x32xf32> to vector<8xf32>
    %21 = vector.shape_cast %20 : vector<8xf32> to vector<8x1xf32>
    %cst_6 = arith.constant 3.125000e-02 : f32
    %22 = vector.broadcast %cst_6 : f32 to vector<8x1xf32>
    %23 = arith.mulf %21, %22 : vector<8x1xf32>
    %24 = vector.broadcast %23 : vector<8x1xf32> to vector<8x32xf32>
    %25 = arith.subf %3, %24 : vector<8x32xf32>
    %26 = arith.mulf %25, %25 : vector<8x32xf32>
    %cst_7 = arith.constant dense<0.000000e+00> : vector<8xf32>
    %27 = vector.multi_reduction <add>, %26, %cst_7 [1] : vector<8x32xf32> to vector<8xf32>
    %28 = vector.shape_cast %27 : vector<8xf32> to vector<8x1xf32>
    %cst_8 = arith.constant 0.0322580636 : f32
    %29 = vector.broadcast %cst_8 : f32 to vector<8x1xf32>
    %30 = arith.mulf %28, %29 : vector<8x1xf32>
    %31 = math.sqrt %30 : vector<8x1xf32>
    %cst_9 = arith.constant 9.99999997E-7 : f32
    %32 = vector.broadcast %cst_9 : f32 to vector<8x1xf32>
    %33 = arith.addf %31, %32 : vector<8x1xf32>
    %34 = tpu.reciprocal %33 {approx = true} : vector<8x1xf32> -> vector<8x1xf32>
    %35 = vector.broadcast %7 : f32 to vector<8x1xf32>
    %36 = arith.mulf %35, %34 : vector<8x1xf32>
    %37 = vector.broadcast %36 : vector<8x1xf32> to vector<8x32xf32>
    %38 = arith.mulf %25, %37 : vector<8x32xf32>
    %39 = vector.broadcast %11 : f32 to vector<8x32xf32>
    %40 = arith.addf %38, %39 : vector<8x32xf32>
    %41 = arith.truncf %40 : vector<8x32xf32> to vector<8x32xbf16>
    %c0_10 = arith.constant 0 : index
    %c0_11 = arith.constant 0 : index
    %c0_12 = arith.constant 0 : index
    %42 = vector.load %arg5[%c0_10, %c0_11, %c0_12] : memref<1x32x96xbf16, #tpu.memory_space<vmem>>, vector<1x32x96xbf16>
    %43 = vector.shape_cast %42 : vector<1x32x96xbf16> to vector<32x96xbf16>
    %cst_13 = arith.constant dense<0.000000e+00> : vector<8x96xf32>
    %44 = tpu.matmul %41, %43, %cst_13 {dimension_numbers = #tpu.dot_dimension_numbers<[1], [0], [0], [1], [0, 0, 1, 1], [], []>} : vector<8x32xbf16>, vector<32x96xbf16>, vector<8x96xf32> -> vector<8x96xf32>
    %45 = vector.extract_strided_slice %44 {offsets = [0, 0], sizes = [8, 32], strides = [1, 1]} : vector<8x96xf32> to vector<8x32xf32>
    %46 = vector.shape_cast %45 : vector<8x32xf32> to vector<8x4x8xf32>
    %47 = tpu.transpose %46, [1, 0, 2] : vector<8x4x8xf32> -> vector<4x8x8xf32>
    %48 = vector.extract_strided_slice %44 {offsets = [0, 32], sizes = [8, 32], strides = [1, 1]} : vector<8x96xf32> to vector<8x32xf32>
    %49 = vector.shape_cast %48 : vector<8x32xf32> to vector<8x4x8xf32>
    %50 = tpu.transpose %49, [1, 0, 2] : vector<8x4x8xf32> -> vector<4x8x8xf32>
    %51 = vector.extract_strided_slice %44 {offsets = [0, 64], sizes = [8, 32], strides = [1, 1]} : vector<8x96xf32> to vector<8x32xf32>
    %52 = vector.shape_cast %51 : vector<8x32xf32> to vector<8x4x8xf32>
    %53 = tpu.transpose %52, [1, 0, 2] : vector<8x4x8xf32> -> vector<4x8x8xf32>
    %54 = arith.truncf %47 : vector<4x8x8xf32> to vector<4x8x8xbf16>
    %55 = arith.truncf %50 : vector<4x8x8xf32> to vector<4x8x8xbf16>
    "tpu.trace_start"() <{level = 10 : i32, message = "hqd,hkd->hqk"}> : () -> ()
    %cst_14 = arith.constant dense<0.000000e+00> : vector<4x8x8xf32>
    %56 = tpu.matmul %54, %55, %cst_14 {dimension_numbers = #tpu.dot_dimension_numbers<[2], [2], [1], [1], [0, 0, 0, 1, 1, 1], [0], [0]>} : vector<4x8x8xbf16>, vector<4x8x8xbf16>, vector<4x8x8xf32> -> vector<4x8x8xf32>
    "tpu.trace_stop"() : () -> ()
    %cst_15 = arith.constant 0.353553385 : f32
    %57 = vector.broadcast %cst_15 : f32 to vector<4x8x8xf32>
    %58 = arith.mulf %56, %57 : vector<4x8x8xf32>
    %c0_16 = arith.constant 0 : index
    %c0_17 = arith.constant 0 : index
    %c0_18 = arith.constant 0 : index
    %59 = vector.load %arg4[%c0_16, %c0_17, %c0_18] : memref<1x1x8xf32, #tpu.memory_space<vmem>>, vector<1x1x8xf32>
    %60 = vector.shape_cast %59 : vector<1x1x8xf32> to vector<1x8xf32>
    %61 = vector.shape_cast %60 : vector<1x8xf32> to vector<1x1x8xf32>
    %62 = vector.broadcast %61 : vector<1x1x8xf32> to vector<4x8x8xf32>
    %63 = arith.addf %58, %62 : vector<4x8x8xf32>
    %cst_19 = arith.constant dense<0xFF800000> : vector<4x8xf32>
    %64 = vector.multi_reduction <maximumf>, %63, %cst_19 [2] : vector<4x8x8xf32> to vector<4x8xf32>
    %65 = vector.shape_cast %64 : vector<4x8xf32> to vector<4x8x1xf32>
    %66 = vector.broadcast %65 : vector<4x8x1xf32> to vector<4x8x8xf32>
    %67 = arith.subf %63, %66 : vector<4x8x8xf32>
    %68 = math.exp %67 : vector<4x8x8xf32>
    %cst_20 = arith.constant dense<0.000000e+00> : vector<4x8xf32>
    %69 = vector.multi_reduction <add>, %68, %cst_20 [2] : vector<4x8x8xf32> to vector<4x8xf32>
    %70 = vector.shape_cast %69 : vector<4x8xf32> to vector<4x8x1xf32>
    %71 = tpu.reciprocal %70 {approx = true} : vector<4x8x1xf32> -> vector<4x8x1xf32>
    %72 = vector.broadcast %71 : vector<4x8x1xf32> to vector<4x8x8xf32>
    %73 = arith.mulf %68, %72 : vector<4x8x8xf32>
    %74 = arith.truncf %73 : vector<4x8x8xf32> to vector<4x8x8xbf16>
    %75 = arith.truncf %53 : vector<4x8x8xf32> to vector<4x8x8xbf16>
    "tpu.trace_start"() <{level = 10 : i32, message = "hqk,hkd->hqd"}> : () -> ()
    %cst_21 = arith.constant dense<0.000000e+00> : vector<4x8x8xf32>
    %76 = tpu.matmul %74, %75, %cst_21 {dimension_numbers = #tpu.dot_dimension_numbers<[2], [1], [1], [2], [0, 0, 0, 1, 1, 2], [0], [0]>} : vector<4x8x8xbf16>, vector<4x8x8xbf16>, vector<4x8x8xf32> -> vector<4x8x8xf32>
    "tpu.trace_stop"() : () -> ()
    %77 = tpu.transpose %76, [1, 0, 2] : vector<4x8x8xf32> -> vector<8x4x8xf32>
    %78 = vector.shape_cast %77 : vector<8x4x8xf32> to vector<8x32xf32>
    %79 = arith.truncf %78 : vector<8x32xf32> to vector<8x32xbf16>
    %c0_22 = arith.constant 0 : index
    %c0_23 = arith.constant 0 : index
    %c0_24 = arith.constant 0 : index
    %80 = vector.load %arg6[%c0_22, %c0_23, %c0_24] : memref<1x32x32xbf16, #tpu.memory_space<vmem>>, vector<1x32x32xbf16>
    %81 = vector.shape_cast %80 : vector<1x32x32xbf16> to vector<32x32xbf16>
    %cst_25 = arith.constant dense<0.000000e+00> : vector<8x32xf32>
    %82 = tpu.matmul %79, %81, %cst_25 {dimension_numbers = #tpu.dot_dimension_numbers<[1], [0], [0], [1], [0, 0, 1, 1], [], []>} : vector<8x32xbf16>, vector<32x32xbf16>, vector<8x32xf32> -> vector<8x32xf32>
    %83 = arith.addf %3, %82 : vector<8x32xf32>
    %cst_26 = arith.constant dense<0.000000e+00> : vector<8xf32>
    %84 = vector.multi_reduction <add>, %83, %cst_26 [1] : vector<8x32xf32> to vector<8xf32>
    %85 = vector.shape_cast %84 : vector<8xf32> to vector<8x1xf32>
    %cst_27 = arith.constant 3.125000e-02 : f32
    %86 = vector.broadcast %cst_27 : f32 to vector<8x1xf32>
    %87 = arith.mulf %85, %86 : vector<8x1xf32>
    %88 = vector.broadcast %87 : vector<8x1xf32> to vector<8x32xf32>
    %89 = arith.subf %83, %88 : vector<8x32xf32>
    %90 = arith.mulf %89, %89 : vector<8x32xf32>
    %cst_28 = arith.constant dense<0.000000e+00> : vector<8xf32>
    %91 = vector.multi_reduction <add>, %90, %cst_28 [1] : vector<8x32xf32> to vector<8xf32>
    %92 = vector.shape_cast %91 : vector<8xf32> to vector<8x1xf32>
    %cst_29 = arith.constant 0.0322580636 : f32
    %93 = vector.broadcast %cst_29 : f32 to vector<8x1xf32>
    %94 = arith.mulf %92, %93 : vector<8x1xf32>
    %95 = math.sqrt %94 : vector<8x1xf32>
    %cst_30 = arith.constant 9.99999997E-7 : f32
    %96 = vector.broadcast %cst_30 : f32 to vector<8x1xf32>
    %97 = arith.addf %95, %96 : vector<8x1xf32>
    %98 = tpu.reciprocal %97 {approx = true} : vector<8x1xf32> -> vector<8x1xf32>
    %99 = vector.broadcast %15 : f32 to vector<8x1xf32>
    %100 = arith.mulf %99, %98 : vector<8x1xf32>
    %101 = vector.broadcast %100 : vector<8x1xf32> to vector<8x32xf32>
    %102 = arith.mulf %89, %101 : vector<8x32xf32>
    %103 = vector.broadcast %19 : f32 to vector<8x32xf32>
    %104 = arith.addf %102, %103 : vector<8x32xf32>
    %105 = arith.truncf %104 : vector<8x32xf32> to vector<8x32xbf16>
    %c0_31 = arith.constant 0 : index
    %c0_32 = arith.constant 0 : index
    %c0_33 = arith.constant 0 : index
    %106 = vector.load %arg7[%c0_31, %c0_32, %c0_33] : memref<1x32x64xbf16, #tpu.memory_space<vmem>>, vector<1x32x64xbf16>
    %107 = vector.shape_cast %106 : vector<1x32x64xbf16> to vector<32x64xbf16>
    %cst_34 = arith.constant dense<0.000000e+00> : vector<8x64xf32>
    %108 = tpu.matmul %105, %107, %cst_34 {dimension_numbers = #tpu.dot_dimension_numbers<[1], [0], [0], [1], [0, 0, 1, 1], [], []>} : vector<8x32xbf16>, vector<32x64xbf16>, vector<8x64xf32> -> vector<8x64xf32>
    %c0_35 = arith.constant 0 : index
    %c0_36 = arith.constant 0 : index
    %c0_37 = arith.constant 0 : index
    %109 = vector.load %arg8[%c0_35, %c0_36, %c0_37] : memref<1x1x64xf32, #tpu.memory_space<vmem>>, vector<1x1x64xf32>
    %110 = vector.shape_cast %109 : vector<1x1x64xf32> to vector<1x64xf32>
    %111 = vector.broadcast %110 : vector<1x64xf32> to vector<8x64xf32>
    %112 = arith.addf %108, %111 : vector<8x64xf32>
    %cst_38 = arith.constant 0.000000e+00 : f32
    %113 = vector.broadcast %cst_38 : f32 to vector<8x64xf32>
    %114 = arith.maximumf %112, %113 : vector<8x64xf32>
    %115 = arith.truncf %114 : vector<8x64xf32> to vector<8x64xbf16>
    %c0_39 = arith.constant 0 : index
    %c0_40 = arith.constant 0 : index
    %c0_41 = arith.constant 0 : index
    %116 = vector.load %arg9[%c0_39, %c0_40, %c0_41] : memref<1x64x32xbf16, #tpu.memory_space<vmem>>, vector<1x64x32xbf16>
    %117 = vector.shape_cast %116 : vector<1x64x32xbf16> to vector<64x32xbf16>
    %cst_42 = arith.constant dense<0.000000e+00> : vector<8x32xf32>
    %118 = tpu.matmul %115, %117, %cst_42 {dimension_numbers = #tpu.dot_dimension_numbers<[1], [0], [0], [1], [0, 0, 1, 1], [], []>} : vector<8x64xbf16>, vector<64x32xbf16>, vector<8x32xf32> -> vector<8x32xf32>
    %c0_43 = arith.constant 0 : index
    %c0_44 = arith.constant 0 : index
    %c0_45 = arith.constant 0 : index
    %119 = vector.load %arg10[%c0_43, %c0_44, %c0_45] : memref<1x1x32xf32, #tpu.memory_space<vmem>>, vector<1x1x32xf32>
    %120 = vector.shape_cast %119 : vector<1x1x32xf32> to vector<1x32xf32>
    %121 = vector.broadcast %120 : vector<1x32xf32> to vector<8x32xf32>
    %122 = arith.addf %118, %121 : vector<8x32xf32>
    %123 = arith.addf %83, %122 : vector<8x32xf32>
    %c0_46 = arith.constant 0 : index
    %c0_47 = arith.constant 0 : index
    %124 = vector.load %arg12[%c0_46, %c0_47] : memref<8x32xf32, #tpu.memory_space<vmem>>, vector<8x32xf32>
    tpu.vector_store %arg12[%c0_46, %c0_47], %123 {strides = array<i32>} : memref<8x32xf32, #tpu.memory_space<vmem>>, vector<8x32xf32>,
    %c1_i32_48 = arith.constant 1 : i32
    %125 = arith.cmpi eq, %arg1, %c1_i32_48 : i32
    %126 = arith.extui %125 : i1 to i32
    %c0_i32_49 = arith.constant 0 : i32
    %127 = arith.cmpi ne, %126, %c0_i32_49 : i32
    scf.if %127 {
      %c8 = arith.constant 8 : index
      %128 = memref.load %arg2[%c8] : memref<12xf32, #tpu.memory_space<smem>>
      %c9 = arith.constant 9 : index
      %129 = memref.load %arg2[%c9] : memref<12xf32, #tpu.memory_space<smem>>
      %cst_50 = arith.constant dense<0.000000e+00> : vector<8xf32>
      %130 = vector.multi_reduction <add>, %123, %cst_50 [1] : vector<8x32xf32> to vector<8xf32>
      %131 = vector.shape_cast %130 : vector<8xf32> to vector<8x1xf32>
      %cst_51 = arith.constant 3.125000e-02 : f32
      %132 = vector.broadcast %cst_51 : f32 to vector<8x1xf32>
      %133 = arith.mulf %131, %132 : vector<8x1xf32>
      %134 = vector.broadcast %133 : vector<8x1xf32> to vector<8x32xf32>
      %135 = arith.subf %123, %134 : vector<8x32xf32>
      %136 = arith.mulf %135, %135 : vector<8x32xf32>
      %cst_52 = arith.constant dense<0.000000e+00> : vector<8xf32>
      %137 = vector.multi_reduction <add>, %136, %cst_52 [1] : vector<8x32xf32> to vector<8xf32>
      %138 = vector.shape_cast %137 : vector<8xf32> to vector<8x1xf32>
      %cst_53 = arith.constant 0.0322580636 : f32
      %139 = vector.broadcast %cst_53 : f32 to vector<8x1xf32>
      %140 = arith.mulf %138, %139 : vector<8x1xf32>
      %141 = math.sqrt %140 : vector<8x1xf32>
      %cst_54 = arith.constant 9.99999997E-7 : f32
      %142 = vector.broadcast %cst_54 : f32 to vector<8x1xf32>
      %143 = arith.addf %141, %142 : vector<8x1xf32>
      %144 = tpu.reciprocal %143 {approx = true} : vector<8x1xf32> -> vector<8x1xf32>
      %145 = vector.broadcast %128 : f32 to vector<8x1xf32>
      %146 = arith.mulf %145, %144 : vector<8x1xf32>
      %147 = vector.broadcast %146 : vector<8x1xf32> to vector<8x32xf32>
      %148 = arith.mulf %135, %147 : vector<8x32xf32>
      %149 = vector.broadcast %129 : f32 to vector<8x32xf32>
      %150 = arith.addf %148, %149 : vector<8x32xf32>
      %151 = vector.shape_cast %150 : vector<8x32xf32> to vector<1x8x32xf32>
      %c0_55 = arith.constant 0 : index
      %c0_56 = arith.constant 0 : index
      %c0_57 = arith.constant 0 : index
      %152 = vector.load %arg11[%c0_55, %c0_56, %c0_57] : memref<1x8x32xf32, #tpu.memory_space<vmem>>, vector<1x8x32xf32>
      tpu.vector_store %arg11[%c0_55, %c0_56, %c0_57], %151 {strides = array<i32>} : memref<1x8x32xf32, #tpu.memory_space<vmem>>, vector<1x8x32xf32>,
    } else {
    }
    return
  }
  func.func @transform_0(%arg0: i32, %arg1: i32) -> i32 {
    %c0_i32 = arith.constant 0 : i32
    %c0_i32_0 = arith.constant 0 : i32
    return %c0_i32 : i32
  }
  func.func @transform_1(%arg0: i32, %arg1: i32) -> (i32, i32, i32) {
    %c0_i32 = arith.constant 0 : i32
    %c0_i32_0 = arith.constant 0 : i32
    %c0_i32_1 = arith.constant 0 : i32
    return %arg0, %c0_i32, %c0_i32_0 : i32, i32, i32
  }
  func.func @transform_2(%arg0: i32, %arg1: i32) -> (i32, i32, i32) {
    %c0_i32 = arith.constant 0 : i32
    %c0_i32_0 = arith.constant 0 : i32
    %c0_i32_1 = arith.constant 0 : i32
    return %arg0, %c0_i32, %c0_i32_0 : i32, i32, i32
  }
  func.func @transform_3(%arg0: i32, %arg1: i32) -> (i32, i32, i32) {
    %c0_i32 = arith.constant 0 : i32
    %c0_i32_0 = arith.constant 0 : i32
    %c0_i32_1 = arith.constant 0 : i32
    return %arg1, %c0_i32, %c0_i32_0 : i32, i32, i32
  }
  func.func @transform_4(%arg0: i32, %arg1: i32) -> (i32, i32, i32) {
    %c0_i32 = arith.constant 0 : i32
    %c0_i32_0 = arith.constant 0 : i32
    %c0_i32_1 = arith.constant 0 : i32
    return %arg1, %c0_i32, %c0_i32_0 : i32, i32, i32
  }
  func.func @transform_5(%arg0: i32, %arg1: i32) -> (i32, i32, i32) {
    %c0_i32 = arith.constant 0 : i32
    %c0_i32_0 = arith.constant 0 : i32
    %c0_i32_1 = arith.constant 0 : i32
    return %arg1, %c0_i32, %c0_i32_0 : i32, i32, i32
  }
  func.func @transform_6(%arg0: i32, %arg1: i32) -> (i32, i32, i32) {
    %c0_i32 = arith.constant 0 : i32
    %c0_i32_0 = arith.constant 0 : i32
    %c0_i32_1 = arith.constant 0 : i32
    return %arg1, %c0_i32, %c0_i32_0 : i32, i32, i32
  }
  func.func @transform_7(%arg0: i32, %arg1: i32) -> (i32, i32, i32) {
    %c0_i32 = arith.constant 0 : i32
    %c0_i32_0 = arith.constant 0 : i32
    %c0_i32_1 = arith.constant 0 : i32
    return %arg1, %c0_i32, %c0_i32_0 : i32, i32, i32
  }
  func.func @transform_8(%arg0: i32, %arg1: i32) -> (i32, i32, i32) {
    %c0_i32 = arith.constant 0 : i32
    %c0_i32_0 = arith.constant 0 : i32
    %c0_i32_1 = arith.constant 0 : i32
    return %arg1, %c0_i32, %c0_i32_0 : i32, i32, i32
  }
  func.func @transform_9(%arg0: i32, %arg1: i32) -> (i32, i32, i32) {
    %c0_i32 = arith.constant 0 : i32
    %c0_i32_0 = arith.constant 0 : i32
    %c0_i32_1 = arith.constant 0 : i32
    return %arg0, %c0_i32, %c0_i32_0 : i32, i32, i32
  }
}

</mosaic_0001>

<bundles_post_ra>
// kernel: tpu_custom_call.1
= control target key start
LH: loop header
LB: loop body
LE: loop exit
PB: predicated region body
PF: predicated region fallthrough
CT: control target
= control target key end

     0   :  { %s3107_s0 = inlined_call_operand.hbm [shape: f32[12], index: 0, kind: input, shape index: {}]   ;;  %s3108_s1 = inlined_call_operand.hbm [shape: f32[2,8,32], index: 1, kind: input, shape index: {}]   ;;  %s3109_s2 = inlined_call_operand.vmem [shape: f32[2,1,8], index: 2, kind: input, shape index: {}]   ;;  %s3110_s3 = inlined_call_operand.vmem [shape: bf16[2,32,96], index: 3, kind: input, shape index: {}]   ;;  %s3111_s4 = inlined_call_operand.vmem [shape: bf16[2,32,32], index: 4, kind: input, shape index: {}]   ;;  %s3112_s5 = inlined_call_operand.vmem [shape: bf16[2,32,64], index: 5, kind: input, shape index: {}]   ;;  %s3113_s6 = inlined_call_operand.vmem [shape: f32[2,1,64], index: 6, kind: input, shape index: {}]   ;;  %s3114_s7 = inlined_call_operand.vmem [shape: bf16[2,64,32], index: 7, kind: input, shape index: {}]   ;;  %s3115_s8 = inlined_call_operand.vmem [shape: f32[2,1,32], index: 8, kind: input, shape index: {}]   ;;  %s3116_s9 = inlined_call_operand.hbm [shape: f32[2,8,32], index: 9, kind: output, shape index: {}]  }
   0x1   :  { %3131 = sst [smem:[#allocation22_spill]] %s3107_s0 }
   0x2   :  { %3132 = sst [smem:[#allocation23_spill]] %s3108_s1 }
   0x3   :  { %3133 = sst [smem:[#allocation24_spill]] %s3116_s9 }
   0x4   :  { %14 = vsyncpa [#allocation6], 0 }
   0x5   :  { %15 = vsyncpa [#allocation4], 0 }
   0x6   :  { %17 = vsyncpa [#allocation4 + $0x1], 0 }
   0x7   :  { %18 = vsyncpa [#allocation5], 0 }
   0x8   :  { %20 = vsyncpa [#allocation5 + $0x1], 0  ;;  %s2618_s30 = smov 0   ;;  %s2620_s10 = smov 0  }
   0x9   :  { %s2622_s11 = smov 0   ;;  %s2624_s12 = smov 0  }
   0xa   :  { %s2626_s13 = smov 0   ;;  %s2628_s14 = smov 0  }
   0xb   :  { %s2630_s15 = smov 0   ;;  %s2632_s16 = smov 0  }
   0xc LB: > { %3134 = sst [smem:[#allocation12_spill]] %s2523_s30  ;;  %s2088_s17 = sadd.s32 4294967295, %s2551_s16   ;;  %s2551_s16 = sphi %s2632_s16, %s26_s16   ;;  %s2547_s15 = sphi %s2630_s15, %s3169_s15   ;;  %s2543_s14 = sphi %s2628_s14, %s3168_s14   ;;  %s2539_s13 = sphi %s2626_s13, %s3167_s13   ;;  %s2535_s12 = sphi %s2624_s12, %s3166_s12   ;;  %s2531_s11 = sphi %s2622_s11, %s3165_s11   ;;  %s2527_s10 = sphi %s2620_s10, %s3164_s10   ;;  %s2523_s30 = sphi %s2618_s30, %s3163_s30  }
   0xd   : > { %3135 = sst [smem:[#allocation13_spill]] %s2527_s10  ;;  %s2089_s18 = sadd.s32 4294967294, %s2551_s16  }
   0xe   : > { %3136 = sst [smem:[#allocation14_spill]] %s2531_s11  ;;  %p79_p0 = scmp.ne.s32.totalorder %s2527_s10, %s2523_s30 }
   0xf   : > { %3137 = sst [smem:[#allocation15_spill]] %s2543_s14  ;;  %p2662_p1 = scmp.eq.s32.totalorder %s2088_s17, 0 }
  0x10   : > { %3138 = sst [smem:[#allocation16_spill]] %s2547_s15  ;;  %p2666_p2 = scmp.eq.s32.totalorder %s2088_s17, 3 }
  0x11   : > { %3139 = sst [smem:[#allocation17_spill]] %s2551_s16  ;;  %p291_p3 = scmp.eq.s32.totalorder %s2089_s18, 3 }
  0x12   : > { %s3140_s19 = scalar_select %p2662_p1, 1, 0 }
  0x13   : > { %p2672_p4 = por %p2662_p1, %p79_p0  ;;  %p2090_p5 = scmp.ge.s32.totalorder %s2551_s16, 1 }
  0x14   : > { %p2677_p6 = por %p291_p3, %p79_p0  ;;  %p298_p7 = scmp.lt.s32.totalorder %s2551_s16, 5 }
  0x15   : > { %s3142_s21 = scalar_select %p2672_p4, 1, 0 }
  0x16   : > { %s3143_s22 = scalar_select %p2677_p6, 1, 0 }
  0x17   : > { %p2682_p8 = pnand %p2090_p5, %p298_p7  ;;  %s35_s24 = sadd.s32 1, %s2543_s14 }
  0x18   : > { %3144 = sst [smem:[#allocation18_spill]] %s3143_s22  ;;  %s38_s25 = sadd.s32 1, %s2547_s15 }
  0x19   : > { %p2275_p9 = pneg %p2682_p8  ;;  %p36_p11 = scmp.ge.s32.totalorder %s35_s24, 2 }
  0x1a   : > { %s3146_s0 = sld [smem:[#allocation22_spill]] }
  0x1b   : > { %p2276_p10 = pnand %p2275_p9, %p2662_p1 }
  0x1d   : > { %p2408_p13 = pneg %p2276_p10 }
  0x20   : > { %s2406_s28 = scalar_lea.hbm %s3146_s0, 16 }
  0x21   : > { %p2407_p12 = scmp.ne.s32.totalorder %s3146_s0, %s2406_s28  ;;  %p2413_p5 = scmp.lt.u32.totalorder %s2406_s28, %s3146_s0 }
  0x23   : > { %p2409_p0 = pnand %p2408_p13, %p2407_p12 }
  0x25   : > { %p2410_p3 = pneg %p2409_p0 }
  0x27   : > { %p2415_p7 = pnand %p2413_p5, %p2410_p3 }
  0x29   : > { %2418 = shalt.err (!%p2415_p7)
}
  0x2a   : > { %s2553_s14 = smov [#allocation3]   ;;  %s3171_s24 = smov (%p36_p11, %s35_s24), 0 }
  0x2b   : > { %2278 = dma.hbm_to_smem (!%p2276_p10), %s3146_s0, 16, %s2553_s14, [#allocation6]  }
  0x2c   : > { %3147 = sst [smem:[#allocation19_spill]] %s3171_s24  ;;  %s3173_s25 = smov (!%p36_p11, %s38_s25), %s2547_s15 }
  0x2d   : > { %s66_s22 = sadd.s32 1, %s2531_s11  ;;  %p73_p9 = scmp.ne.s32.totalorder %s2531_s11, %s2527_s10 }
  0x2e   : > { %p40_p12 = scmp.ge.s32.totalorder %s3173_s25, 2  ;;  %p74_p13 = scmp.eq.s32.totalorder %s2551_s16, 0 }
  0x2f   : > { %p2713_p0 = por %p2666_p2, %p73_p9  ;;  %p2288_p3 = scmp.lt.s32.totalorder %s2551_s16, 4 }
  0x30   : > { %s3175_s25 = smov (%p40_p12, %s3173_s25), 0  ;;  %p75_p5 = por %p74_p13, %p73_p9 }
  0x31   : > { %s3148_s9 = scalar_select %p2713_p0, 1, 0 }
  0x32   : > { %3149 = sst [smem:[#allocation20_spill]] %s3175_s25  ;;  %s320_s30 = sand.u32 1, %s2531_s11  }
  0x33   : > { %s63_s14 = ssub.s32 %s2547_s15, %s3175_s25  ;;  %s2093_s26 = sshll.u32 %s320_s30, 3 }
  0x34   : > { %p64_p10 = scmp.eq.s32.totalorder %s63_s14, 0  ;;  %s2094_s27 = sshll.u32 %s2547_s15, 7 }
  0x35   : > { %s3151_s1 = sld [smem:[#allocation23_spill]]  ;;  %s324_s18 = scalar_lea.vmem [#allocation7], %s2093_s26 }
  0x36   : > { %s2725_s28 = scalar_select %p64_p10, %s2531_s11, %s66_s22  }
  0x37   : > { %s331_s0 = sshll.u32 %s324_s18, 4  ;;  %p2736_p2 = pnand %p2288_p3, %p75_p5  ;;  %s2732_s0 = int_to_ptr.vmem [resolvable:$true] %s331_s0 }
  0x38   : > { %3150 = sst [smem:[#allocation21_spill]] %s2725_s28  ;;  %s321_s22 = scalar_lea.sflag [#allocation4], %s320_s30 }
  0x39   : > { %p2421_p7 = pneg %p2736_p2 }
  0x3b   : > { %s2730_s20 = scalar_lea.hbm %s3151_s1, %s2094_s27  ;;  %s2424_s29 = scalar_lea.hbm %s3151_s1, 256 }
  0x3c   : > { %s2419_s25 = scalar_lea.hbm %s2730_s20, 128  ;;  %p2425_p13 = scmp.lt.u32.totalorder %s2730_s20, %s3151_s1 }
  0x3d   : > { %p2420_p11 = scmp.ne.s32.totalorder %s2730_s20, %s2419_s25  ;;  %p2426_p3 = scmp.lt.u32.totalorder %s2424_s29, %s2419_s25 }
  0x3e   : > { %p2428_p10 = scmp.lt.u32.totalorder %s2419_s25, %s2730_s20 }
  0x3f   : > { %p2422_p9 = pnand %p2421_p7, %p2420_p11  ;;  %p2427_p5 = por %p2426_p3, %p2425_p13 }
  0x41   : > { %p2423_p12 = pneg %p2422_p9  ;;  %p2429_p6 = por %p2428_p10, %p2427_p5 }
  0x43   : > { %p2430_p0 = pnand %p2429_p6, %p2423_p12 }
  0x45   : > { %2433 = shalt.err (!%p2430_p0)
}
  0x46   : > { %s2434_s30 = scalar_lea.vmem %s2732_s0, 128  ;;  %s2554_s26 = smov [#allocation7]  }
  0x47   : > { %p2435_p11 = scmp.ne.s32.totalorder %s2732_s0, %s2434_s30  ;;  %s2439_s27 = sshll.u32 %s2554_s26, 4  ;;  %s2440_s27 = int_to_ptr.vmem [resolvable:$false] %s2439_s27 }
  0x48   : > { %s2441_s17 = scalar_lea.vmem %s2440_s27, 256  ;;  %p2442_p1 = scmp.lt.s32.totalorder %s2732_s0, %s2440_s27 }
  0x49   : > { %p2437_p9 = pnand %p2435_p11, %p2421_p7  ;;  %p2443_p13 = scmp.lt.s32.totalorder %s2441_s17, %s2434_s30 }
  0x4b   : > { %p2438_p4 = pneg %p2437_p9  ;;  %p2444_p3 = por %p2443_p13, %p2442_p1 }
  0x4d   : > { %p2445_p5 = pnand %p2444_p3, %p2438_p4 }
  0x4f   : > { %2448 = shalt.err (!%p2445_p5)
}
  0x50   : > { %2282 = dma.hbm_to_vmem [thread:$0]  (!%p2736_p2), %s2730_s20, 128, %s2732_s0, %s321_s22  }
  0x51   : > { %390 = sbr.rel (%p2682_p8) target bundleno = 3190 (0xc76), region = 56  ;;  %p3153_p6 = scmp.ne.s32.totalorder (!%p2682_p8), %s3140_s19, 0 }
  0x58   : > { %2510 = dma.done.wait (%p3153_p6), [#allocation6], 16  }
  0x59   : > { %2512 = vsyncadd (%p3153_p6), [#allocation6], 4294967280  ;;  %s2772_s25 = sand.u32 1, %s2527_s10   ;;  %p3154_p1 = scmp.ne.s32.totalorder %s3142_s21, 0 }
  0x5a   : > { %s2097_s29 = sshll.u32 %s2772_s25, 3  ;;  %s397_s14 = scalar_lea.sflag [#allocation4], %s2772_s25 }
  0x5b   : > { %s400_s18 = scalar_lea.vmem [#allocation7], %s2097_s29 }
  0x5c   : > { %2514 = dma.done.wait (%p3154_p1), %s397_s14, 128  }
  0x5d   : > { %2516 = vsyncadd (%p3154_p1), %s397_s14, 4294967168 }
  0x5e   : > { %405 = sfence }
  0x5f   : > { %p465_p4 = scmp.lt.s32.totalorder %s2539_s13, 1  ;;  %p468_p8 = scmp.lt.s32.totalorder %s2535_s12, 1 }
  0x60   : > { %s2820_s14 = scalar_lea.vmem [#allocation8], %s2097_s29  ;;  %p2107_p0 = scmp.ne.s32.totalorder %s2535_s12, 0 }
  0x61   : > { %s2783_s0 = scalar_select %p465_p4, %s2539_s13, 1 }
  0x62   : > { %s2786_s19 = scalar_select %p468_p8, %s2535_s12, 1 }
  0x63   : > { %498 = sbr.rel (%p2107_p0) target bundleno = 106 (0x6a), region = 68  ;;  %v499_v0 = vld [vmem:[%s400_s18] sm:$0xff] (!%p2107_p0)  ;;  %vm500_vm0 = vcmask (!%p2107_p0), 261120  }
  0x64   : > { %s2149_s22 = sshll.u32 %s2786_s19, 4  ;;  %s2152_s21 = sshll.u32 %s2786_s19, 5  ;;  %501 = vst.msk [vmem:[#allocation2] sm:$0xff] (!%p2107_p0), %vm500_vm0, %v499_v0 }
  0x65   : > { %s472_s1 = scalar_lea.vmem %s3110_s3, %s2149_s22  ;;  %s2803_s28 = scalar_lea.vmem %s3111_s4, %s2149_s22 }
  0x66   : > { %s2808_s11 = scalar_lea.vmem %s3112_s5, %s2149_s22  ;;  %s2814_s30 = scalar_lea.vmem %s3114_s7, %s2152_s21 }
  0x67   : > { %s493_s17 = scalar_lea.vmem %s3115_s8, %s2786_s19 }
  0x6a PF: > { %vm511_vm1 = vcmask 261120   ;;  %v2368_v8 = vld [vmem:[%s472_s1] sm:$0xff]   ;;  %v2555_v9 = vmov 0.0   ;;  %vm2556_vm2 = vmmov 0   ;;  %v2369_v10 = vld [vmem:[%s472_s1 + $0x8] sm:$0xff]   ;;  %s2838_s1 = sshll.u32 %s2535_s12, 2  ;;  %v611_v35 = vlaneseq  ;;  %s3155_s23 = scalar_lea.vmem %s3109_s2, %s2783_s0 }
  0x6b   : > { %v2823_v1 = vld [vmem:[#allocation2] sm:$0xff]  ;;  %2183 = vmatprep.subr.bf16.mxu0 %v2555_v9  ;;  %2187 = vmatprep.mubr.msk.bf16.mxu0 %vm2556_vm2, %v2555_v9  ;;  %s504_s10 = sld [smem:[#allocation3 + %s2838_s1]]  ;;  %s505_s15 = sadd.s32 1, %s2838_s1  ;;  %v2561_v33 = vmov 1983009808   ;;  %vm1046_vm5 = vcmask 64512  }
  0x6c   : > { %v512_v2 = vsel %vm511_vm1, %v2823_v1, 0.0  ;;  %2184 = vmatpush3.bf16.msra.mxu0 %v2368_v8  ;;  %2191 = vmatprep.subr.bf16.mxu1 %v2555_v9  ;;  %s506_s16 = sld [smem:[#allocation3 + %s505_s15]]  ;;  %s2557_s24 = smov 104   ;;  %v609_v34 = vunpack.c.l.s4 %v2561_v33  ;;  %v612_v37 = vshrl.u32 %v611_v35, 7  ;;  %v2562_v39 = vmov 1934713408  }
  0x6d   : > { %513 = vadd.xlane.f32.xlu0 %v512_v2  ;;  %2185 = vmatprep.subr.bf16.mxu0 %v2555_v9  ;;  %s2558_s29 = smov 120   ;;  %s2559_s18 = smov 112   ;;  %v641_v40 = vunpack.c.l.s4 %v2562_v39  ;;  %vm1301_vm6 = vcmask 1043456   ;;  %vm1632_vm7 = vcmask 130048   ;;  %vm1634_vm8 = vcmask 195584  }
  0x6e   : > { %2193 = vmatprep.mubr.msk.bf16.mxu1 %vm2556_vm2, %v2555_v9  ;;  %s2560_s21 = smov 96   ;;  %v610_v36 = vunpack.c.0.s8 %v609_v34  ;;  %s2563_s0 = smov 64   ;;  %vm1829_vm11 = vcmask 523264  }
  0x6f   : > { %v642_v47 = vunpack.c.0.s8 %v641_v40  ;;  %s2565_s20 = smov 8   ;;  %s2566_s26 = smov 24  }
  0x70   : > { %2186 = vmatpush3.bf16.msra.mxu0 %v2369_v10  ;;  %v2864_v43 = vsub.s32 %v610_v36, %v612_v37  ;;  %s509_s15 = sadd.s32 3, %s2838_s1  ;;  %p2142_p2 = scmp.ne.s32.totalorder %s2535_s12, 1 }
  0x71   : > { %2197 = vmatprep.subr.bf16.mxu0 %v2555_v9  ;;  %v531_v19 = vstv %s504_s10  ;;  %v2874_v53 = vsub.s32 %v642_v47, %v612_v37  ;;  %s2143_s12 = sld [smem:[#allocation3 + $0x8]] (!%p2142_p2) }
  0x72   : > { %v534_v22 = vstv %s506_s16  ;;  %s510_s16 = sld [smem:[#allocation3 + %s509_s15]] }
  0xfa   : > { %v514_v3 = vpop.xlane.xlu0 %513 }
  0xfb   : > { %v515_v4 = vmul.f32 0.03125, %v514_v3 }
  0xfd   : > { %v516_v5 = vsub.f32 %v2823_v1, %v515_v4 }
  0xff   : > { %v517_v6 = vmul.f32 %v516_v5, %v516_v5 }
 0x101   : > { %v518_v7 = vsel %vm511_vm1, %v517_v6, 0.0 }
 0x102   : > { %519 = vadd.xlane.f32.xlu0 %v518_v7 }
 0x18f   : > { %v520_v11 = vpop.xlane.xlu0 %519 }
 0x190   : > { %v521_v12 = vmul.f32 0.032258064, %v520_v11 }
 0x192   : > { %2378 = vrsqrt.f32 %v521_v12  ;;  %vm524_vm3 = vcmp.eq.f32.partialorder %v521_v12, inf  ;;  %v527_v15 = vand.u32 2147483648, %v521_v12  ;;  %vm526_vm4 = vcmp.eq.f32.partialorder %v521_v12, 0.0 }
 0x19c   : > { %v2379_v13 = vpop.eup %2378 }
 0x19d   : > { %v523_v14 = vmul.f32 %v2379_v13, %v521_v12 }
 0x19f   : > { %v525_v16 = vsel %vm524_vm3, %v521_v12, %v523_v14 }
 0x1a0   : > { %v528_v17 = vsel %vm526_vm4, %v527_v15, %v525_v16 }
 0x1a1   : > { %v529_v18 = vadd.f32 1e-06, %v528_v17 }
 0x1a3   : > { %2380 = vrcp.f32 %v529_v18 }
 0x1ad   : > { %v2381_v20 = vpop.eup %2380 }
 0x1ae   : > { %v532_v21 = vmul.f32 %v2381_v20, %v531_v19 }
 0x1b0   : > { %v533_v23 = vmul.f32 %v532_v21, %v516_v5 }
 0x1b2   : > { %v535_v24 = vadd.f32 %v534_v22, %v533_v23 }
 0x1b4   : > { %v536_v25 = vpack.c.bf16 %v535_v24, %v535_v24 }
 0x1b6   : > { %2188 = vmatmul.mubr.msk.bf16.vlgmr.msra.gmra.mrb[0].mxu0 %vm511_vm1, %v536_v25 }
 0x1b7   : > { %2199 = vmatprep.mubr.msk.bf16.mxu0 %vm2556_vm2, %v2555_v9 }
 0x289   : > { %v2845_v26 = vpop.f32.mrb[0].mxu0 }
 0x28a   : > { %603 = vrot.lane.b32.xlu0 %v2845_v26, %s2557_s24  ;;  %597 = vrot.lane.b32.xlu1 %v2845_v26, %s2558_s29  ;;  %v2189_v27 = vpop.f32.mrb[1].mxu0 }
 0x28b   : > { %v593_v28 = vpop.f32.mrb[2].mxu0 }
 0x28c   : > { %v2190_v29 = vpop.f32.mrb[3].mxu0 }
 0x28e   : > { %600 = vrot.lane.b32.xlu1 %v2845_v26, %s2559_s18 }
 0x292   : > { %742 = vrot.lane.b32.xlu1 %v2845_v26, %s2560_s21 }
 0x2fc   : > { %v2851_v30 = vpop.permute.xlu1 %597  ;;  %v2857_v32 = vpop.permute.xlu0 %603 }
 0x2fd   : > { %744 = vrot.lane.b32.xlu1 %v2851_v30, %s2560_s21  ;;  %v622_v44 = vcombine.low %v2851_v30, %v2857_v32  ;;  %v623_v45 = vcombine.high %v2851_v30, %v2857_v32 }
 0x2ff   : > { %v630_v50 = vrot.slane %v622_v44, %v2864_v43  ;;  %v637_v51 = vrot.slane %v623_v45, %v2864_v43 }
 0x300   : > { %v2854_v31 = vpop.permute.xlu1 %600 }
 0x301   : > { %746 = vrot.lane.b32.xlu1 %v2854_v31, %s2560_s21  ;;  %v606_v41 = vcombine.low %v2845_v26, %v2854_v31  ;;  %v607_v42 = vcombine.high %v2845_v26, %v2854_v31 }
 0x303   : > { %v614_v48 = vrot.slane %v606_v41, %v2864_v43  ;;  %v621_v49 = vrot.slane %v607_v42, %v2864_v43 }
 0x304   : > { %v743_v38 = vpop.permute.xlu1 %742 }
 0x305   : > { %748 = vrot.lane.b32.xlu1 %v2857_v32, %s2560_s21  ;;  %v638_v54 = vcombine.low %v614_v48, %v630_v50  ;;  %v639_v55 = vcombine.high %v614_v48, %v630_v50  ;;  %v654_v56 = vcombine.low %v621_v49, %v637_v51  ;;  %v655_v57 = vcombine.high %v621_v49, %v637_v51 }
 0x307   : > { %v646_v63 = vrot.slane %v638_v54, %v2874_v53  ;;  %v653_v0 = vrot.slane %v639_v55, %v2874_v53  ;;  %v662_v2 = vrot.slane %v654_v56, %v2874_v53  ;;  %v669_v3 = vrot.slane %v655_v57, %v2874_v53 }
 0x309   : > { %v674_v13 = vcombine.low %v646_v63, %v653_v0  ;;  %v2112_v14 = vcombine.high %v646_v63, %v653_v0  ;;  %v690_v15 = vcombine.low %v662_v2, %v669_v3  ;;  %v2113_v16 = vcombine.high %v662_v2, %v669_v3 }
 0x30b   : > { %v681_v25 = vrot.slane %v674_v13, %v2864_v43  ;;  %v689_v27 = vrot.slane %v2112_v14, %v2864_v43  ;;  %v697_v28 = vrot.slane %v690_v15, %v2864_v43  ;;  %v705_v29 = vrot.slane %v2113_v16, %v2864_v43  ;;  %v2122_v15 = vld [vmem:[%s3155_s23] ss:$0 sm:$0xff] }
 0x30d   : > { %v706_v44 = vcombine.low %v681_v25, %v689_v27  ;;  %v722_v45 = vcombine.low %v697_v28, %v705_v29 }
 0x30f   : > { %v730_v54 = vrot.slane %v722_v45, %v2874_v53 }
 0x36f   : > { %v745_v46 = vpop.permute.xlu1 %744 }
 0x373   : > { %v747_v52 = vpop.permute.xlu1 %746 }
 0x374   : > { %v754_v58 = vcombine.low %v743_v38, %v747_v52  ;;  %v755_v59 = vcombine.high %v743_v38, %v747_v52  ;;  %v714_v52 = vrot.slane %v706_v44, %v2874_v53 }
 0x376   : > { %v762_v4 = vrot.slane %v754_v58, %v2864_v43  ;;  %v769_v5 = vrot.slane %v755_v59, %v2864_v43  ;;  %v707_v59 = vcombine.high %v681_v25, %v689_v27 }
 0x377   : > { %v749_v60 = vpop.permute.xlu1 %748 }
 0x378   : > { %v770_v61 = vcombine.low %v745_v46, %v749_v60  ;;  %v771_v62 = vcombine.high %v745_v46, %v749_v60  ;;  %v723_v60 = vcombine.high %v697_v28, %v705_v29 }
 0x37a   : > { %v778_v6 = vrot.slane %v770_v61, %v2864_v43  ;;  %v785_v7 = vrot.slane %v771_v62, %v2864_v43  ;;  %v738_v61 = vcombine.low %v714_v52, %v730_v54  ;;  %v739_v62 = vcombine.high %v714_v52, %v730_v54 }
 0x37c   : > { %v786_v8 = vcombine.low %v762_v4, %v778_v6  ;;  %v787_v10 = vcombine.high %v762_v4, %v778_v6  ;;  %v802_v11 = vcombine.low %v769_v5, %v785_v7  ;;  %v803_v12 = vcombine.high %v769_v5, %v785_v7 }
 0x37d   : > { %v1038_v2 = vpack.c.bf16 %v738_v61, %v738_v61  ;;  %v1039_v3 = vpack.c.bf16 %v739_v62, %v739_v62  ;;  %v721_v4 = vrot.slane %v707_v59, %v2874_v53  ;;  %v737_v5 = vrot.slane %v723_v60, %v2874_v53 }
 0x37e   : > { %v794_v17 = vrot.slane %v786_v8, %v2874_v53  ;;  %v801_v18 = vrot.slane %v787_v10, %v2874_v53  ;;  %v810_v19 = vrot.slane %v802_v11, %v2874_v53  ;;  %v817_v20 = vrot.slane %v803_v12, %v2874_v53 }
 0x37f   : > { %v740_v8 = vcombine.low %v721_v4, %v737_v5  ;;  %v741_v10 = vcombine.high %v721_v4, %v737_v5 }
 0x380   : > { %v822_v21 = vcombine.low %v794_v17, %v801_v18  ;;  %v2114_v22 = vcombine.high %v794_v17, %v801_v18  ;;  %v838_v23 = vcombine.low %v810_v19, %v817_v20  ;;  %v2115_v24 = vcombine.high %v810_v19, %v817_v20 }
 0x381   : > { %v1040_v11 = vpack.c.bf16 %v740_v8, %v740_v8  ;;  %v1041_v12 = vpack.c.bf16 %v741_v10, %v741_v10 }
 0x382   : > { %v829_v33 = vrot.slane %v822_v21, %v2864_v43  ;;  %v837_v34 = vrot.slane %v2114_v22, %v2864_v43  ;;  %v845_v35 = vrot.slane %v838_v23, %v2864_v43  ;;  %v853_v36 = vrot.slane %v2115_v24, %v2864_v43 }
 0x384   : > { %v854_v37 = vcombine.low %v829_v33, %v837_v34  ;;  %v870_v38 = vcombine.low %v845_v35, %v853_v36  ;;  %v855_v39 = vcombine.high %v829_v33, %v837_v34  ;;  %v871_v40 = vcombine.high %v845_v35, %v853_v36 }
 0x386   : > { %v862_v41 = vrot.slane %v854_v37, %v2874_v53  ;;  %v878_v42 = vrot.slane %v870_v38, %v2874_v53  ;;  %v869_v48 = vrot.slane %v855_v39, %v2874_v53  ;;  %v885_v49 = vrot.slane %v871_v40, %v2874_v53 }
 0x388   : > { %v886_v46 = vcombine.low %v862_v41, %v878_v42  ;;  %v887_v47 = vcombine.high %v862_v41, %v878_v42  ;;  %v888_v57 = vcombine.low %v869_v48, %v885_v49  ;;  %v889_v58 = vcombine.high %v869_v48, %v885_v49 }
 0x38a   : > { %v1042_v50 = vpack.c.bf16 %v886_v46, %v886_v46  ;;  %v1043_v51 = vpack.c.bf16 %v887_v47, %v887_v47  ;;  %v1044_v63 = vpack.c.bf16 %v888_v57, %v888_v57  ;;  %v1045_v0 = vpack.c.bf16 %v889_v58, %v889_v58 }
 0x38c   : > { %v1051_v55 = vsel %vm1046_vm5, %v1042_v50, 0  ;;  %v1097_v56 = vsel %vm1046_vm5, %v1043_v51, 0  ;;  %v1143_v6 = vsel %vm1046_vm5, %v1044_v63, 0  ;;  %v1189_v7 = vsel %vm1046_vm5, %v1045_v0, 0 }
 0x38d   : > { %2192 = vmatpush3.bf16.xpose.msra.mxu1 %v1051_v55  ;;  %2198 = vmatpush3.bf16.xpose.msra.mxu0 %v1097_v56 }
 0x38e   : > { %2203 = vmatprep.subr.bf16.mxu1 %v2555_v9  ;;  %2209 = vmatprep.subr.bf16.mxu0 %v2555_v9 }
 0x394   : > { %2194 = vmatmul.mubr.msk.bf16.vlgmr.msra.gmra.mrb[0].mxu1 %vm1046_vm5, %v1038_v2  ;;  %2200 = vmatmul.mubr.msk.bf16.vlgmr.msra.gmra.mrb[4].mxu0 %vm1046_vm5, %v1039_v3 }
 0x395   : > { %2204 = vmatpush3.bf16.xpose.msra.mxu1 %v1143_v6  ;;  %2210 = vmatpush3.bf16.xpose.msra.mxu0 %v1189_v7 }
 0x396   : > { %2205 = vmatprep.mubr.msk.bf16.mxu1 %vm2556_vm2, %v2555_v9  ;;  %2211 = vmatprep.mubr.msk.bf16.mxu0 %vm2556_vm2, %v2555_v9 }
 0x397   : > { %2215 = vmatprep.subr.bf16.mxu1 %v2555_v9  ;;  %2221 = vmatprep.subr.bf16.mxu0 %v2555_v9 }
 0x39c   : > { %2206 = vmatmul.mubr.msk.bf16.vlgmr.msra.gmra.mrb[4].mxu1 %vm1046_vm5, %v1040_v11  ;;  %2212 = vmatmul.mubr.msk.bf16.vlgmr.msra.gmra.mrb[8].mxu0 %vm1046_vm5, %v1041_v12 }
 0x39d   : > { %2217 = vmatprep.mubr.msk.bf16.mxu1 %vm2556_vm2, %v2555_v9  ;;  %2223 = vmatprep.mubr.msk.bf16.mxu0 %vm2556_vm2, %v2555_v9 }
 0x467   : > { %v1087_v13 = vpop.f32.mrb[0].mxu1  ;;  %v1133_v14 = vpop.f32.mrb[4].mxu0 }
 0x468   : > { %v1231_v16 = vmul.f32 0.35355338, %v1087_v13  ;;  %v1232_v17 = vmul.f32 0.35355338, %v1133_v14  ;;  %v2195_v18 = vpop.f32.mrb[1].mxu1  ;;  %v2201_v19 = vpop.f32.mrb[5].mxu0 }
 0x469   : > { %v1090_v20 = vpop.f32.mrb[2].mxu1  ;;  %v1136_v21 = vpop.f32.mrb[6].mxu0 }
 0x46a   : > { %v2196_v22 = vpop.f32.mrb[3].mxu1  ;;  %v2202_v23 = vpop.f32.mrb[7].mxu0  ;;  %v1242_v24 = vadd.f32 %v2122_v15, %v1231_v16  ;;  %v1243_v25 = vadd.f32 %v2122_v15, %v1232_v17 }
 0x46c   : > { %v1246_v27 = vsel %vm1046_vm5, %v1242_v24, -inf  ;;  %v1249_v28 = vsel %vm1046_vm5, %v1243_v25, -inf }
 0x46d   : > { %1247 = vmax.xlane.f32.xlu1 %v1246_v27  ;;  %1250 = vmax.xlane.f32.xlu0 %v1249_v28 }
 0x46f   : > { %v1179_v29 = vpop.f32.mrb[4].mxu1  ;;  %v1225_v33 = vpop.f32.mrb[8].mxu0 }
 0x470   : > { %v1233_v34 = vmul.f32 0.35355338, %v1179_v29  ;;  %v1234_v35 = vmul.f32 0.35355338, %v1225_v33  ;;  %v2207_v36 = vpop.f32.mrb[5].mxu1  ;;  %v2213_v37 = vpop.f32.mrb[9].mxu0 }
 0x471   : > { %v1182_v38 = vpop.f32.mrb[6].mxu1  ;;  %v1228_v39 = vpop.f32.mrb[10].mxu0 }
 0x472   : > { %v2208_v40 = vpop.f32.mrb[7].mxu1  ;;  %v2214_v41 = vpop.f32.mrb[11].mxu0  ;;  %v1244_v42 = vadd.f32 %v2122_v15, %v1233_v34  ;;  %v1245_v44 = vadd.f32 %v2122_v15, %v1234_v35 }
 0x474   : > { %v1252_v45 = vsel %vm1046_vm5, %v1244_v42, -inf  ;;  %v1255_v46 = vsel %vm1046_vm5, %v1245_v44, -inf }
 0x475   : > { %1253 = vmax.xlane.f32.xlu1 %v1252_v45  ;;  %1256 = vmax.xlane.f32.xlu0 %v1255_v46 }
 0x486   : > { %890 = vrot.lane.b32.xlu1 %v2845_v26, %s2563_s0 }
 0x4fa   : > { %v1248_v47 = vpop.xlane.xlu1 %1247  ;;  %v1251_v48 = vpop.xlane.xlu0 %1250 }
 0x4fb   : > { %v1258_v49 = vsub.f32 %v1242_v24, %v1248_v47  ;;  %v1259_v50 = vsub.f32 %v1243_v25, %v1251_v48 }
 0x4fd   : > { %v1262_v51 = vmul.f32 1.442695, %v1258_v49  ;;  %v1264_v52 = vmul.f32 1.442695, %v1259_v50 }
 0x4ff   : > { %2382 = vpow2.f32 %v1262_v51 }
 0x500   : > { %2384 = vpow2.f32 %v1264_v52 }
 0x502   : > { %v1254_v26 = vpop.xlane.xlu1 %1253  ;;  %v1257_v59 = vpop.xlane.xlu0 %1256 }
 0x503   : > { %v1260_v58 = vsub.f32 %v1244_v42, %v1254_v26  ;;  %v1261_v60 = vsub.f32 %v1245_v44, %v1257_v59 }
 0x505   : > { %v1266_v61 = vmul.f32 1.442695, %v1260_v58  ;;  %v1268_v62 = vmul.f32 1.442695, %v1261_v60 }
 0x507   : > { %2386 = vpow2.f32 %v1266_v61 }
 0x508   : > { %2388 = vpow2.f32 %v1268_v62 }
 0x509   : > { %v2934_v54 = vpop.eup %2382 }
 0x50a   : > { %v2936_v55 = vpop.eup %2384  ;;  %v1270_v56 = vsel %vm1046_vm5, %v2934_v54, 0.0 }
 0x50b   : > { %1271 = vadd.xlane.f32.xlu1 %v1270_v56  ;;  %v1273_v57 = vsel %vm1046_vm5, %v2936_v55, 0.0 }
 0x50c   : > { %1274 = vadd.xlane.f32.xlu0 %v1273_v57 }
 0x511   : > { %v2945_v63 = vpop.eup %2386 }
 0x512   : > { %v2947_v0 = vpop.eup %2388  ;;  %v1276_v2 = vsel %vm1046_vm5, %v2945_v63, 0.0 }
 0x51c   : > { %894 = vrot.lane.b32.xlu1 %v2854_v31, %s2563_s0  ;;  %v1279_v31 = vsel %vm1046_vm5, %v2947_v0, 0.0 }
 0x520   : > { %896 = vrot.lane.b32.xlu1 %v2857_v32, %s2563_s0 }
 0x522   : > { %892 = vrot.lane.b32.xlu0 %v2851_v30, %s2563_s0  ;;  %v891_v30 = vpop.permute.xlu1 %890 }
 0x541   : > { %1277 = vadd.xlane.f32.xlu0 %v1276_v2 }
 0x544   : > { %1280 = vadd.xlane.f32.xlu1 %v1279_v31 }
 0x598   : > { %v1272_v32 = vpop.xlane.xlu1 %1271 }
 0x599   : > { %v1275_v3 = vpop.xlane.xlu0 %1274  ;;  %2390 = vrcp.f32 %v1272_v32 }
 0x59a   : > { %2392 = vrcp.f32 %v1275_v3 }
 0x59c   : > { %v895_v4 = vpop.permute.xlu1 %894 }
 0x59d   : > { %v902_v5 = vcombine.low %v891_v30, %v895_v4  ;;  %v903_v6 = vcombine.high %v891_v30, %v895_v4  ;;  %v893_v7 = vpop.permute.xlu0 %892 }
 0x59f   : > { %v910_v12 = vrot.slane %v902_v5, %v2864_v43  ;;  %v917_v13 = vrot.slane %v903_v6, %v2864_v43 }
 0x5a0   : > { %v897_v8 = vpop.permute.xlu1 %896 }
 0x5a1   : > { %v918_v10 = vcombine.low %v893_v7, %v897_v8  ;;  %v919_v11 = vcombine.high %v893_v7, %v897_v8  ;;  %v2370_v7 = vld [vmem:[%s2803_s28] sm:$0xff]  }
 0x5a3   : > { %v926_v14 = vrot.slane %v918_v10, %v2864_v43  ;;  %v933_v15 = vrot.slane %v919_v11, %v2864_v43  ;;  %v2391_v42 = vpop.eup %2390 }
 0x5a4   : > { %v2393_v46 = vpop.eup %2392  ;;  %v1286_v51 = vmul.f32 %v2391_v42, %v2934_v54 }
 0x5a5   : > { %v934_v16 = vcombine.low %v910_v12, %v926_v14  ;;  %v935_v17 = vcombine.high %v910_v12, %v926_v14  ;;  %v950_v18 = vcombine.low %v917_v13, %v933_v15  ;;  %v951_v19 = vcombine.high %v917_v13, %v933_v15 }
 0x5a6   : > { %v1287_v52 = vmul.f32 %v2393_v46, %v2936_v55  ;;  %v1290_v61 = vpack.c.bf16 %v1286_v51, %v1286_v51 }
 0x5a7   : > { %v942_v20 = vrot.slane %v934_v16, %v2874_v53  ;;  %v949_v21 = vrot.slane %v935_v17, %v2874_v53  ;;  %v958_v22 = vrot.slane %v950_v18, %v2874_v53  ;;  %v965_v23 = vrot.slane %v951_v19, %v2874_v53 }
 0x5a8   : > { %v1291_v62 = vpack.c.bf16 %v1287_v52, %v1287_v52 }
 0x5a9   : > { %v970_v24 = vcombine.low %v942_v20, %v949_v21  ;;  %v2116_v25 = vcombine.high %v942_v20, %v949_v21  ;;  %v986_v27 = vcombine.low %v958_v22, %v965_v23  ;;  %v2117_v28 = vcombine.high %v958_v22, %v965_v23 }
 0x5ab   : > { %v977_v29 = vrot.slane %v970_v24, %v2864_v43  ;;  %v985_v33 = vrot.slane %v2116_v25, %v2864_v43  ;;  %v993_v34 = vrot.slane %v986_v27, %v2864_v43  ;;  %v1001_v35 = vrot.slane %v2117_v28, %v2864_v43 }
 0x5ad   : > { %v1002_v36 = vcombine.low %v977_v29, %v985_v33  ;;  %v1003_v37 = vcombine.high %v977_v29, %v985_v33  ;;  %v1018_v38 = vcombine.low %v993_v34, %v1001_v35  ;;  %v1019_v39 = vcombine.high %v993_v34, %v1001_v35 }
 0x5af   : > { %v1010_v40 = vrot.slane %v1002_v36, %v2874_v53  ;;  %v1017_v41 = vrot.slane %v1003_v37, %v2874_v53  ;;  %v1026_v44 = vrot.slane %v1018_v38, %v2874_v53  ;;  %v1033_v45 = vrot.slane %v1019_v39, %v2874_v53  ;;  %v2371_v39 = vld [vmem:[%s2803_s28 + $0x8] sm:$0xff]   ;;  %s2564_s28 = smov 16  }
 0x5b1   : > { %v1034_v47 = vcombine.low %v1010_v40, %v1026_v44  ;;  %v1035_v48 = vcombine.high %v1010_v40, %v1026_v44  ;;  %v1036_v49 = vcombine.low %v1017_v41, %v1033_v45  ;;  %v1037_v50 = vcombine.high %v1017_v41, %v1033_v45 }
 0x5b3   : > { %v1294_v56 = vpack.c.bf16 %v1034_v47, %v1034_v47  ;;  %v1295_v57 = vpack.c.bf16 %v1035_v48, %v1035_v48  ;;  %v1296_v59 = vpack.c.bf16 %v1036_v49, %v1036_v49  ;;  %v1297_v60 = vpack.c.bf16 %v1037_v50, %v1037_v50 }
 0x5b5   : > { %v1303_v26 = vsel %vm1301_vm6, %v1294_v56, 0  ;;  %v1349_v58 = vsel %vm1301_vm6, %v1295_v57, 0  ;;  %v1395_v54 = vsel %vm1301_vm6, %v1296_v59, 0  ;;  %v1441_v55 = vsel %vm1301_vm6, %v1297_v60, 0 }
 0x5b6   : > { %2216 = vmatpush3.bf16.msra.mxu1 %v1303_v26  ;;  %2222 = vmatpush3.bf16.msra.mxu0 %v1349_v58 }
 0x5b7   : > { %2227 = vmatprep.subr.bf16.mxu1 %v2555_v9  ;;  %2233 = vmatprep.subr.bf16.mxu0 %v2555_v9 }
 0x5b9   : > { %2218 = vmatmul.mubr.msk.bf16.vlgmr.msra.gmra.mrb[8].mxu1 %vm1046_vm5, %v1290_v61  ;;  %2224 = vmatmul.mubr.msk.bf16.vlgmr.msra.gmra.mrb[12].mxu0 %vm1046_vm5, %v1291_v62 }
 0x5ba   : > { %2228 = vmatpush3.bf16.msra.mxu1 %v1395_v54  ;;  %2234 = vmatpush3.bf16.msra.mxu0 %v1441_v55 }
 0x5bb   : > { %2229 = vmatprep.mubr.msk.bf16.mxu1 %vm2556_vm2, %v2555_v9  ;;  %2235 = vmatprep.mubr.msk.bf16.mxu0 %vm2556_vm2, %v2555_v9 }
 0x5bc   : > { %2239 = vmatprep.subr.bf16.mxu1 %v2555_v9  ;;  %2247 = vmatprep.subr.bf16.mxu0 %v2555_v9 }
 0x5ce   : > { %v1278_v2 = vpop.xlane.xlu0 %1277 }
 0x5cf   : > { %2394 = vrcp.f32 %v1278_v2 }
 0x5d1   : > { %v1281_v31 = vpop.xlane.xlu1 %1280 }
 0x5d2   : > { %2396 = vrcp.f32 %v1281_v31 }
 0x5d9   : > { %v2395_v30 = vpop.eup %2394 }
 0x5da   : > { %v1288_v32 = vmul.f32 %v2395_v30, %v2945_v63 }
 0x5dc   : > { %v2397_v3 = vpop.eup %2396  ;;  %v1292_v4 = vpack.c.bf16 %v1288_v32, %v1288_v32 }
 0x5dd   : > { %v1289_v5 = vmul.f32 %v2397_v3, %v2947_v0 }
 0x5de   : > { %2230 = vmatmul.mubr.msk.bf16.vlgmr.msra.gmra.mrb[12].mxu1 %vm1046_vm5, %v1292_v4 }
 0x5df   : > { %v1293_v6 = vpack.c.bf16 %v1289_v5, %v1289_v5  ;;  %2243 = vmatprep.mubr.msk.bf16.mxu1 %vm2556_vm2, %v2555_v9  ;;  %2240 = vmatpush3.bf16.msra.mxu1 %v2370_v7 }
 0x5e0   : > { %2241 = vmatprep.subr.bf16.mxu1 %v2555_v9 }
 0x5e1   : > { %2236 = vmatmul.mubr.msk.bf16.vlgmr.msra.gmra.mrb[16].mxu0 %vm1046_vm5, %v1293_v6 }
 0x5e2   : > { %2251 = vmatprep.mubr.msk.bf16.mxu0 %vm2556_vm2, %v2555_v9 }
 0x5e3   : > { %2242 = vmatpush3.bf16.msra.mxu1 %v2371_v39  ;;  %v2377_v39 = vld [vmem:[%s2814_s30 + $0x18] sm:$0xff]  }
 0x5e4   : > { %2255 = vmatprep.subr.bf16.mxu1 %v2555_v9 }
 0x68c   : > { %v1339_v63 = vpop.f32.mrb[8].mxu1  ;;  %v1385_v8 = vpop.f32.mrb[12].mxu0 }
 0x68d   : > { %v2219_v10 = vpop.f32.mrb[9].mxu1  ;;  %v2225_v11 = vpop.f32.mrb[13].mxu0 }
 0x68e   : > { %v1342_v0 = vpop.f32.mrb[10].mxu1  ;;  %v1388_v12 = vpop.f32.mrb[14].mxu0 }
 0x68f   : > { %v2220_v13 = vpop.f32.mrb[11].mxu1  ;;  %v2226_v14 = vpop.f32.mrb[15].mxu0 }
 0x6b1   : > { %v1431_v15 = vpop.f32.mrb[12].mxu1 }
 0x6b2   : > { %v1483_v16 = vcombine.low %v1339_v63, %v1431_v15  ;;  %v1484_v17 = vcombine.high %v1339_v63, %v1431_v15  ;;  %v2231_v18 = vpop.f32.mrb[13].mxu1 }
 0x6b3   : > { %v1434_v19 = vpop.f32.mrb[14].mxu1  ;;  %v2375_v18 = vld [vmem:[%s2814_s30 + $0x8] sm:$0xff]  }
 0x6b4   : > { %v2232_v20 = vpop.f32.mrb[15].mxu1  ;;  %v1477_v21 = vpop.f32.mrb[16].mxu0  ;;  %v1491_v27 = vrot.slane %v1483_v16, %v2864_v43  ;;  %v1498_v28 = vrot.slane %v1484_v17, %v2864_v43  ;;  %v2372_v16 = vld [vmem:[%s2808_s11] sm:$0xff]  }
 0x6b5   : > { %v1499_v22 = vcombine.low %v1385_v8, %v1477_v21  ;;  %v1500_v23 = vcombine.high %v1385_v8, %v1477_v21  ;;  %v2237_v24 = vpop.f32.mrb[17].mxu0  ;;  %2248 = vmatpush3.bf16.msra.mxu0 %v2372_v16  ;;  %v2374_v17 = vld [vmem:[%s2814_s30] sm:$0xff]  }
 0x6b6   : > { %v1480_v25 = vpop.f32.mrb[18].mxu0  ;;  %2249 = vmatprep.subr.bf16.mxu0 %v2555_v9 }
 0x6b7   : > { %v1507_v29 = vrot.slane %v1499_v22, %v2864_v43  ;;  %v1514_v33 = vrot.slane %v1500_v23, %v2864_v43  ;;  %v2238_v34 = vpop.f32.mrb[19].mxu0 }
 0x6b8   : > { %v1719_v34 = vstv %s510_s16 }
 0x6b9   : > { %v1515_v35 = vcombine.low %v1491_v27, %v1507_v29  ;;  %v1516_v36 = vcombine.high %v1491_v27, %v1507_v29  ;;  %v1531_v37 = vcombine.low %v1498_v28, %v1514_v33  ;;  %v1532_v38 = vcombine.high %v1498_v28, %v1514_v33 }
 0x6bb   : > { %v1523_v40 = vrot.slane %v1515_v35, %v2874_v53  ;;  %v1530_v41 = vrot.slane %v1516_v36, %v2874_v53  ;;  %v1539_v42 = vrot.slane %v1531_v37, %v2874_v53  ;;  %v1546_v44 = vrot.slane %v1532_v38, %v2874_v53  ;;  %v2376_v38 = vld [vmem:[%s2814_s30 + $0x10] sm:$0xff]  }
 0x6bd   : > { %v1551_v45 = vcombine.low %v1523_v40, %v1530_v41  ;;  %v2127_v46 = vcombine.high %v1523_v40, %v1530_v41  ;;  %v1567_v47 = vcombine.low %v1539_v42, %v1546_v44  ;;  %v2128_v48 = vcombine.high %v1539_v42, %v1546_v44 }
 0x6bf   : > { %v1558_v49 = vrot.slane %v1551_v45, %v2864_v43  ;;  %v1566_v50 = vrot.slane %v2127_v46, %v2864_v43  ;;  %v1574_v51 = vrot.slane %v1567_v47, %v2864_v43  ;;  %v1582_v52 = vrot.slane %v2128_v48, %v2864_v43 }
 0x6c1   : > { %v1584_v56 = vcombine.high %v1558_v49, %v1566_v50  ;;  %v1600_v57 = vcombine.high %v1574_v51, %v1582_v52  ;;  %v1583_v26 = vcombine.low %v1558_v49, %v1566_v50  ;;  %v1599_v58 = vcombine.low %v1574_v51, %v1582_v52 }
 0x6c3   : > { %v1598_v59 = vrot.slane %v1584_v56, %v2874_v53  ;;  %v1614_v60 = vrot.slane %v1600_v57, %v2874_v53  ;;  %v1591_v61 = vrot.slane %v1583_v26, %v2874_v53  ;;  %v1607_v62 = vrot.slane %v1599_v58, %v2874_v53 }
 0x6c5   : > { %v1617_v54 = vcombine.low %v1598_v59, %v1614_v60  ;;  %v1616_v55 = vcombine.high %v1591_v61, %v1607_v62  ;;  %v1618_v2 = vcombine.high %v1598_v59, %v1614_v60  ;;  %v1615_v31 = vcombine.low %v1591_v61, %v1607_v62 }
 0x6c7   : > { %1624 = vrot.lane.b32.xlu1 %v1617_v54, %s2564_s28  ;;  %1620 = vrot.lane.b32.xlu0 %v1616_v55, %s2565_s20 }
 0x6cb   : > { %1628 = vrot.lane.b32.xlu0 %v1618_v2, %s2566_s26 }
 0x739   : > { %v1621_v43 = vpop.permute.xlu0 %1620  ;;  %v1625_v30 = vpop.permute.xlu1 %1624 }
 0x73a   : > { %v1631_v32 = vsel %vm1046_vm5, %v1615_v31, %v1621_v43 }
 0x73b   : > { %v1633_v4 = vsel %vm1632_vm7, %v1631_v32, %v1625_v30 }
 0x73d   : > { %v1629_v3 = vpop.permute.xlu0 %1628 }
 0x73e   : > { %v1635_v5 = vsel %vm1634_vm8, %v1633_v4, %v1629_v3  ;;  %v1900_v4 = vstv (!%p2142_p2), %s2143_s12 }
 0x73f   : > { %v1636_v53 = vpack.c.bf16 %v1635_v5, %v1635_v5 }
 0x741   : > { %2244 = vmatmul.mubr.msk.bf16.vlgmr.msra.gmra.mrb[16].mxu1 %vm511_vm1, %v1636_v53 }
 0x742   : > { %2263 = vmatprep.mubr.msk.bf16.mxu1 %vm2556_vm2, %v2555_v9  ;;  %2256 = vmatpush3.bf16.msra.mxu1 %v2374_v17 }
 0x743   : > { %2257 = vmatprep.subr.bf16.mxu1 %v2555_v9 }
 0x746   : > { %2258 = vmatpush3.bf16.msra.mxu1 %v2375_v18 }
 0x747   : > { %2259 = vmatprep.subr.bf16.mxu1 %v2555_v9 }
 0x74a   : > { %2260 = vmatpush3.bf16.msra.mxu1 %v2376_v38 }
 0x74b   : > { %2261 = vmatprep.subr.bf16.mxu1 %v2555_v9  ;;  %v2136_v9 = vld [vmem:[%s493_s17] ss:$0 sm:$0xff] }
 0x74e   : > { %2262 = vmatpush3.bf16.msra.mxu1 %v2377_v39 }
 0x814   : > { %v1690_v6 = vpop.f32.mrb[16].mxu1 }
 0x815   : > { %v3018_v7 = vadd.f32 %v1690_v6, %v2823_v1  ;;  %v2245_v63 = vpop.f32.mrb[17].mxu1  ;;  %v2373_v1 = vld [vmem:[%s2808_s11 + $0x8] sm:$0xff]   ;;  %s507_s11 = sadd.s32 2, %s2838_s1  ;;  %s3156_s1 = scalar_lea.vmem %s3113_s6, %s2786_s19 }
 0x816   : > { %v1693_v8 = vpop.f32.mrb[18].mxu1  ;;  %2250 = vmatpush3.bf16.msra.mxu0 %v2373_v1  ;;  %s508_s10 = sld [smem:[#allocation3 + %s507_s11]]  ;;  %v2132_v40 = vld [vmem:[%s3156_s1] ss:$0 sm:$0xff] }
 0x817   : > { %v2246_v10 = vpop.f32.mrb[19].mxu1  ;;  %v1697_v11 = vsel %vm511_vm1, %v3018_v7, 0.0  ;;  %s2144_s19 = sld [smem:[#allocation3 + $0x9]] (!%p2142_p2) }
 0x818   : > { %1698 = vadd.xlane.f32.xlu1 %v1697_v11 }
 0x81c   : > { %v1716_v28 = vstv %s508_s10 }
 0x81d   : > { %v1903_v6 = vstv (!%p2142_p2), %s2144_s19 }
 0x8a5   : > { %v1699_v0 = vpop.xlane.xlu1 %1698 }
 0x8a6   : > { %v1700_v12 = vmul.f32 0.03125, %v1699_v0 }
 0x8a8   : > { %v1701_v13 = vsub.f32 %v3018_v7, %v1700_v12 }
 0x8aa   : > { %v1702_v14 = vmul.f32 %v1701_v13, %v1701_v13 }
 0x8ac   : > { %v1703_v15 = vsel %vm511_vm1, %v1702_v14, 0.0 }
 0x8ad   : > { %1704 = vadd.xlane.f32.xlu0 %v1703_v15 }
 0x93a   : > { %v1705_v19 = vpop.xlane.xlu0 %1704 }
 0x93b   : > { %v1706_v20 = vmul.f32 0.032258064, %v1705_v19 }
 0x93d   : > { %2398 = vrsqrt.f32 %v1706_v20  ;;  %vm1709_vm9 = vcmp.eq.f32.partialorder %v1706_v20, inf  ;;  %v1712_v23 = vand.u32 2147483648, %v1706_v20  ;;  %vm1711_vm10 = vcmp.eq.f32.partialorder %v1706_v20, 0.0 }
 0x947   : > { %v2399_v21 = vpop.eup %2398 }
 0x948   : > { %v1708_v22 = vmul.f32 %v2399_v21, %v1706_v20 }
 0x94a   : > { %v1710_v24 = vsel %vm1709_vm9, %v1706_v20, %v1708_v22 }
 0x94b   : > { %v1713_v25 = vsel %vm1711_vm10, %v1712_v23, %v1710_v24 }
 0x94c   : > { %v1714_v27 = vadd.f32 1e-06, %v1713_v25 }
 0x94e   : > { %2400 = vrcp.f32 %v1714_v27 }
 0x958   : > { %v2401_v29 = vpop.eup %2400 }
 0x959   : > { %v1717_v33 = vmul.f32 %v2401_v29, %v1716_v28 }
 0x95b   : > { %v1718_v35 = vmul.f32 %v1717_v33, %v1701_v13 }
 0x95d   : > { %v1720_v36 = vadd.f32 %v1719_v34, %v1718_v35 }
 0x95f   : > { %v1721_v37 = vpack.c.bf16 %v1720_v36, %v1720_v36 }
 0x961   : > { %2252 = vmatmul.mubr.msk.bf16.vlgmr.msra.gmra.mrb[20].mxu0 %vm511_vm1, %v1721_v37 }
 0xa34   : > { %v1782_v41 = vpop.f32.mrb[20].mxu0 }
 0xa35   : > { %v1783_v42 = vadd.f32 %v2132_v40, %v1782_v41  ;;  %v2253_v44 = vpop.f32.mrb[21].mxu0 }
 0xa36   : > { %v1785_v45 = vpop.f32.mrb[22].mxu0 }
 0xa37   : > { %v1788_v46 = vmax.f32 %v1783_v42, 0.0  ;;  %v2254_v47 = vpop.f32.mrb[23].mxu0 }
 0xa39   : > { %v1789_v48 = vpack.c.bf16 %v1788_v46, %v1788_v46 }
 0xa3b   : > { %2264 = vmatmul.mubr.msk.bf16.vlgmr.msra.gmra.mrb[20].mxu1 %vm1829_vm11, %v1789_v48 }
 0xb0d   : > { %1878 = sbr.rel (%p2142_p2) target bundleno = 3164 (0xc5c), region = 72 }
 0xb0e   : > { %v1867_v49 = vpop.f32.mrb[20].mxu1 }
 0xb0f   : > { %v1868_v50 = vadd.f32 %v2136_v9, %v1867_v49  ;;  %v2265_v51 = vpop.f32.mrb[21].mxu1 }
 0xb10   : > { %v1870_v52 = vpop.f32.mrb[22].mxu1 }
 0xb11   : > { %v1873_v56 = vadd.f32 %v1868_v50, %v3018_v7  ;;  %v2266_v57 = vpop.f32.mrb[23].mxu1 }
 0xb13   : > { %1874 = vst.msk [vmem:[#allocation2] sm:$0xff] %vm511_vm1, %v1873_v56  ;;  %v1881_v26 = vsel (!%p2142_p2), %vm511_vm1, %v1873_v56, 0.0 }
 0xb14   : > { %1882 = vadd.xlane.f32.xlu0 %v1881_v26 }
 0xba1   : > { %v1883_v58 = vpop.xlane.xlu0 %1882 }
 0xba2   : > { %v1884_v59 = vmul.f32 0.03125, %v1883_v58 }
 0xba4   : > { %v1885_v60 = vsub.f32 %v1873_v56, %v1884_v59 }
 0xba6   : > { %v1886_v61 = vmul.f32 %v1885_v60, %v1885_v60 }
 0xba8   : > { %v1887_v62 = vsel %vm511_vm1, %v1886_v61, 0.0 }
 0xba9   : > { %1888 = vadd.xlane.f32.xlu0 %v1887_v62 }
 0xc36   : > { %v1889_v54 = vpop.xlane.xlu0 %1888 }
 0xc37   : > { %v1890_v55 = vmul.f32 0.032258064, %v1889_v54 }
 0xc39   : > { %2402 = vrsqrt.f32 %v1890_v55  ;;  %vm1893_vm12 = vcmp.eq.f32.partialorder %v1890_v55, inf  ;;  %v1896_v43 = vand.u32 2147483648, %v1890_v55  ;;  %vm1895_vm13 = vcmp.eq.f32.partialorder %v1890_v55, 0.0 }
 0xc43   : > { %v2403_v2 = vpop.eup %2402 }
 0xc44   : > { %v1892_v31 = vmul.f32 %v2403_v2, %v1890_v55 }
 0xc46   : > { %v1894_v30 = vsel %vm1893_vm12, %v1890_v55, %v1892_v31 }
 0xc47   : > { %v1897_v32 = vsel %vm1895_vm13, %v1896_v43, %v1894_v30 }
 0xc48   : > { %v1898_v3 = vadd.f32 1e-06, %v1897_v32 }
 0xc4a   : > { %2404 = vrcp.f32 %v1898_v3 }
 0xc54   : > { %v2405_v5 = vpop.eup %2404 }
 0xc55   : > { %v1901_v53 = vmul.f32 %v2405_v5, %v1900_v4 }
 0xc57   : > { %v1902_v7 = vmul.f32 %v1901_v53, %v1885_v60 }
 0xc59   : > { %v1904_v63 = vadd.f32 %v1903_v6, %v1902_v7 }
 0xc5b   : > { %1905 = vst.msk [vmem:[%s2820_s14] sm:$0xff] %vm511_vm1, %v1904_v63 }
 0xc5c PF: > { %s2146_s30 = sshll.u32 %s2539_s13, 7  ;;  %s3157_s27 = sld [smem:[#allocation24_spill]] }
 0xc5d   : > { %s1920_s0 = sshll.u32 %s2820_s14, 4  ;;  %s1907_s28 = scalar_lea.sflag [#allocation5], %s2772_s25  ;;  %s1921_s0 = int_to_ptr.vmem [resolvable:$true] %s1920_s0 }
 0xc5e   : > { %s2449_s20 = scalar_lea.vmem %s1921_s0, 128  ;;  %p3158_p12 = scmp.ne.s32.totalorder %s3148_s9, 0 }
 0xc5f   : > { %p2450_p7 = scmp.ne.s32.totalorder %s1921_s0, %s2449_s20  ;;  %s2567_s26 = smov [#allocation8]  }
 0xc60   : > { %s2453_s11 = sshll.u32 %s2567_s26, 4  ;;  %s2454_s11 = int_to_ptr.vmem [resolvable:$false] %s2453_s11 }
 0xc61   : > { %p2451_p10 = pnand %p2450_p7, %p3158_p12  ;;  %s2455_s10 = scalar_lea.vmem %s2454_s11, 256 }
 0xc62   : > { %s3058_s23 = scalar_lea.hbm %s3157_s27, %s2146_s30  ;;  %p2456_p9 = scmp.lt.s32.totalorder %s1921_s0, %s2454_s11 }
 0xc63   : > { %p2452_p11 = pneg %p2451_p10  ;;  %p2457_p13 = scmp.lt.s32.totalorder %s2455_s10, %s2449_s20 }
 0xc65   : > { %p2458_p3 = por %p2457_p13, %p2456_p9 }
 0xc67   : > { %p2459_p5 = pnand %p2458_p3, %p2452_p11 }
 0xc69   : > { %2462 = shalt.err (!%p2459_p5)
}
 0xc6a   : > { %s2463_s13 = scalar_lea.hbm %s3058_s23, 128  ;;  %s2467_s15 = scalar_lea.hbm %s3157_s27, 256 }
 0xc6b   : > { %p2464_p6 = scmp.ne.s32.totalorder %s3058_s23, %s2463_s13  ;;  %p2468_p8 = scmp.lt.u32.totalorder %s3058_s23, %s3157_s27 }
 0xc6c   : > { %p2469_p0 = scmp.lt.u32.totalorder %s2467_s15, %s2463_s13  ;;  %p2471_p7 = scmp.lt.u32.totalorder %s2463_s13, %s3058_s23 }
 0xc6d   : > { %p2465_p1 = pnand %p2464_p6, %p3158_p12 }
 0xc6e   : > { %p2470_p2 = por %p2469_p0, %p2468_p8 }
 0xc6f   : > { %p2466_p4 = pneg %p2465_p1 }
 0xc70   : > { %p2472_p10 = por %p2471_p7, %p2470_p2 }
 0xc72   : > { %p2473_p11 = pnand %p2472_p10, %p2466_p4 }
 0xc74   : > { %2476 = shalt.err (!%p2473_p11)
}
 0xc75   : > { %2273 = dma.vmem_to_hbm [thread:$0]  (%p3158_p12), %s1921_s0, 128, %s3058_s23, %s1907_s28  }
 0xc76 PF: > { %s3159_s29 = sld [smem:[#allocation17_spill]]  ;;  %s3160_s1 = sld [smem:[#allocation12_spill]] }
 0xc77   : > { %s3161_s18 = sld [smem:[#allocation18_spill]] }
 0xc7c   : > { %p2290_p9 = scmp.ge.s32.totalorder %s3159_s29, 2  ;;  %s1932_s21 = sand.u32 1, %s3160_s1  }
 0xc7d   : > { %p3162_p13 = scmp.ne.s32.totalorder %s3161_s18, 0  ;;  %s1933_s12 = scalar_lea.sflag [#allocation5], %s1932_s21 }
 0xc7f   : > { %p2284_p3 = pnand %p2290_p9, %p3162_p13 }
 0xc81   : > { %2518 = dma.done.wait (!%p2284_p3), %s1933_s12, 128  }
 0xc82   : > { %2520 = vsyncadd (!%p2284_p3), %s1933_s12, 4294967168  ;;  %s26_s16 = sadd.s32 1, %s3159_s29   ;;  %s3163_s30 = sld [smem:[#allocation13_spill]] }
 0xc83   : > { %p23_p5 = scmp.ge.s32.totalorder %s26_s16, 6   ;;  %s3164_s10 = sld [smem:[#allocation14_spill]] }
 0xc84   : > { %s3165_s11 = sld [smem:[#allocation21_spill]]  ;;  %s3166_s12 = sld [smem:[#allocation15_spill]] }
 0xc85   : > { %s3167_s13 = sld [smem:[#allocation16_spill]]  ;;  %s3168_s14 = sld [smem:[#allocation19_spill]] }
 0xc86   : > { %s3169_s15 = sld [smem:[#allocation20_spill]]  ;;  %25 = sbr.rel (!%p23_p5) target bundleno = 12 (0xc), region = 135 }
 0xc8d   :  { %1938 = vsyncpa [#allocation4], 1 }
 0xc8e   :  { %1940 = vsyncpa [#allocation4 + $0x1], 1 }
 0xc8f   :  { %1941 = vsyncpa [#allocation5], 1 }
 0xc90   :  { %1943 = vsyncpa [#allocation5 + $0x1], 1 }
 0xc91   :  { %1944 = vsyncpa [#allocation6], 1 }
 0xc92   :  { %1946 = vsyncpa [#allocation6 + $0x1], 1 }

</bundles_post_ra>
